<compile_context>
chip_gen: v6e
topology: v6e:2x2x1
jax: 0.10.0
libtpu: 0.0.40
codegen_flags: <defaults>
</compile_context>

<pallas_src>
import functools

import jax
import jax.numpy as jnp
from jax.experimental import pallas as pl
from jax.experimental.pallas import tpu as pltpu


def _round_up(x, m):
    return (x + m - 1) // m * m


# ---------------------------------------------------------------------------
# Pass 1: tiled GEMM (im2col conv) + per-M-tile partial BatchNorm moments.
# ---------------------------------------------------------------------------
def _gemm_stats_kernel(p_ref, w_ref, conv_ref, stats_ref, acc_ref):
    """grid = (M_tiles, K_tiles); axis 1 (K) is the reduction axis.

    p_ref:     (tm, tk)     bf16 im2col patch tile
    w_ref:     (tk, Cp)     bf16 weight tile
    conv_ref:  (tm, Cp)     bf16 conv output tile (written on last K step)
    stats_ref: (1, 2, Cp)   f32 per-M-tile [sum, sum_of_squares]
    acc_ref:   (tm, Cp)     f32 VMEM accumulator
    """
    k = pl.program_id(1)

    @pl.when(k == 0)
    def _():
        acc_ref[...] = jnp.zeros_like(acc_ref)

    acc_ref[...] += jnp.dot(p_ref[...], w_ref[...],
                            preferred_element_type=jnp.float32)

    @pl.when(k == pl.num_programs(1) - 1)
    def _():
        conv = acc_ref[...]                                   # f32
        conv_ref[...] = conv.astype(conv_ref.dtype)           # bf16 writeback
        s1 = jnp.sum(conv, axis=0, keepdims=True)             # (1, Cp) f32
        s2 = jnp.sum(conv * conv, axis=0, keepdims=True)      # (1, Cp) f32
        stats_ref[...] = jnp.concatenate([s1, s2], axis=0).reshape(
            stats_ref.shape)


# ---------------------------------------------------------------------------
# Pass 2: BN affine (precomputed per-channel scale/shift) + leaky_relu.
# One FMA + one select per element -> memory-bound; lane-dense tiles.
# ---------------------------------------------------------------------------
def _bn_lrelu_kernel(conv_ref, scale_ref, shift_ref, o_ref, *, slope):
    x = conv_ref[...].astype(jnp.float32)
    y = x * scale_ref[...] + shift_ref[...]
    o_ref[...] = jnp.where(y >= 0.0, y, slope * y).astype(o_ref.dtype)


def _im2col_3x3_same(x_nhwc):
    """(N,H,W,C) -> (N*H*W, 9*C) patches for a 3x3 'same' conv (zero padded)."""
    n, h, w, c = x_nhwc.shape
    xp = jnp.pad(x_nhwc, ((0, 0), (1, 1), (1, 1), (0, 0)))
    taps = [xp[:, dy:dy + h, dx:dx + w, :] for dy in range(3) for dx in range(3)]
    return jnp.concatenate(taps, axis=-1).reshape(n * h * w, 9 * c)


def conv_bn_lrelu(x_nhwc, w_hwio, gamma, beta, *, eps=1e-5, slope=0.1,
                  out_dtype=jnp.float32):
    """3x3 'same' conv -> BatchNorm (training-mode batch stats) -> leaky_relu.

    The conv bias is intentionally omitted: the BN mean subtraction cancels any
    constant per-channel shift exactly, so dropping it changes nothing.
    """
    n, h, w, c = x_nhwc.shape
    cout = w_hwio.shape[-1]
    m = n * h * w
    k9 = 9 * c

    # Alignment: pad K and Cout to multiples of 128 (zero padding is exact).
    c_pad = _round_up(cout, 128)
    k_pad = _round_up(k9, 128)
    tk = 256 if k_pad % 256 == 0 else 128
    tm = 512 if m >= 512 else _round_up(m, 8)
    m_pad = _round_up(m, tm)
    n_m = m_pad // tm
    n_k = k_pad // tk

    # im2col in bf16 (halves the dominant HBM stream; MXU is bf16-native).
    patches = _im2col_3x3_same(x_nhwc.astype(jnp.bfloat16))
    patches = jnp.pad(patches, ((0, m_pad - m), (0, k_pad - k9)))

    w2d = w_hwio.reshape(k9, cout).astype(jnp.bfloat16)
    w2d = jnp.pad(w2d, ((0, k_pad - k9), (0, c_pad - cout)))

    # Explicit VMEM budget (double-buffered streams + accumulator), clamped to
    # [16 MiB, 48 MiB] so it is safe on every chip generation.
    est1 = (2 * tm * tk * 2 + 2 * tk * c_pad * 2     # bf16 input streams
            + tm * c_pad * 4                         # f32 accumulator
            + 2 * tm * c_pad * 2                     # bf16 conv writeback
            + 2 * 2 * c_pad * 4)                     # f32 stats writeback
    est2 = 2 * tm * c_pad * 2 + 4 * c_pad * 4 + 2 * tm * c_pad * 4
    vmem_limit = int(min(48 * 2 ** 20, max(16 * 2 ** 20, 4 * max(est1, est2))))

    conv2d, stats = pl.pallas_call(
        _gemm_stats_kernel,
        out_shape=(jax.ShapeDtypeStruct((m_pad, c_pad), jnp.bfloat16),
                   jax.ShapeDtypeStruct((n_m, 2, c_pad), jnp.float32)),
        grid_spec=pltpu.PrefetchScalarGridSpec(
            num_scalar_prefetch=0,
            grid=(n_m, n_k),
            in_specs=[pl.BlockSpec((tm, tk), lambda i, k: (i, k)),
                      pl.BlockSpec((tk, c_pad), lambda i, k: (k, 0))],
            out_specs=(pl.BlockSpec((tm, c_pad), lambda i, k: (i, 0)),
                       pl.BlockSpec((1, 2, c_pad), lambda i, k: (i, 0, 0))),
            scratch_shapes=[pltpu.VMEM((tm, c_pad), jnp.float32)]),
        compiler_params=pltpu.CompilerParams(
            dimension_semantics=("parallel", "arbitrary"),
            vmem_limit_bytes=vmem_limit),
    )(patches, w2d)

    # Combine the tiny per-tile partial moments and fold BN into scale/shift.
    # Zero-padded rows/channels contribute exactly zero, so dividing by the
    # true element count keeps the statistics exact.
    count = jnp.float32(m)
    tot = jnp.sum(stats, axis=0)                            # (2, Cp)
    mean = tot[0] / count
    var = jnp.maximum(tot[1] / count - mean * mean, 0.0)    # biased variance
    gamma_p = jnp.pad(gamma.astype(jnp.float32), (0, c_pad - cout))
    beta_p = jnp.pad(beta.astype(jnp.float32), (0, c_pad - cout))
    scale = gamma_p * jax.lax.rsqrt(var + eps)
    shift = beta_p - mean * scale

    out2d = pl.pallas_call(
        functools.partial(_bn_lrelu_kernel, slope=slope),
        out_shape=jax.ShapeDtypeStruct((m_pad, c_pad), out_dtype),
        grid_spec=pltpu.PrefetchScalarGridSpec(
            num_scalar_prefetch=0,
            grid=(n_m,),
            in_specs=[pl.BlockSpec((tm, c_pad), lambda i: (i, 0)),
                      pl.BlockSpec((1, c_pad), lambda i: (0, 0)),
                      pl.BlockSpec((1, c_pad), lambda i: (0, 0))],
            out_specs=pl.BlockSpec((tm, c_pad), lambda i: (i, 0))),
        compiler_params=pltpu.CompilerParams(
            dimension_semantics=("parallel",),
            vmem_limit_bytes=vmem_limit),
    )(conv2d, scale.reshape(1, c_pad), shift.reshape(1, c_pad))

    return out2d[:m, :cout].reshape(n, h, w, cout)


def init_residual_params(key, channels):
    """Deterministic init matching nn.Conv2d / nn.BatchNorm2d defaults in spirit."""
    fan_in = channels * 3 * 3
    bound = 1.0 / float(fan_in) ** 0.5
    ks = jax.random.split(key, 4)

    def conv_init(kw, kb):
        wgt = jax.random.uniform(kw, (3, 3, channels, channels), jnp.float32,
                                 -bound, bound)
        b = jax.random.uniform(kb, (channels,), jnp.float32, -bound, bound)
        return wgt, b

    w1, b1 = conv_init(ks[0], ks[1])
    w2, b2 = conv_init(ks[2], ks[3])
    g = jnp.ones((channels,), jnp.float32)
    be = jnp.zeros((channels,), jnp.float32)
    return dict(w1=w1, b1=b1, g1=g, be1=be, w2=w2, b2=b2, g2=g, be2=be)


def residual_forward(x_nchw, p):
    """Forward of the `Residual` module. Input/output are NCHW like PyTorch."""
    x = jnp.transpose(x_nchw, (0, 2, 3, 1))              # NCHW -> NHWC
    # Conv biases (p["b1"], p["b2"]) are canceled exactly by the training-mode
    # BN mean subtraction and therefore are not applied in the kernels.
    x = conv_bn_lrelu(x, p["w1"], p["g1"], p["be1"], out_dtype=jnp.bfloat16)
    x = conv_bn_lrelu(x, p["w2"], p["g2"], p["be2"], out_dtype=jnp.float32)
    return jnp.transpose(x, (0, 3, 1, 2))                # NHWC -> NCHW


def _reference_forward(x_nchw, p):
    """Pure-JAX f32 reference implementing the exact module math (with bias)."""
    def layer(x, w, b, g, be):
        n, h, wd, c = x.shape
        conv = _im2col_3x3_same(x) @ w.reshape(-1, w.shape[-1]) + b
        mean = conv.mean(axis=0, keepdims=True)
        var = ((conv - mean) ** 2).mean(axis=0, keepdims=True)
        y = (conv - mean) * g / jnp.sqrt(var + 1e-5) + be
        y = jnp.where(y >= 0.0, y, 0.1 * y)
        return y.reshape(n, h, wd, c)

    x = jnp.transpose(x_nchw, (0, 2, 3, 1)).astype(jnp.float32)
    x = layer(x, p["w1"], p["b1"], p["g1"], p["be1"])
    x = layer(x, p["w2"], p["b2"], p["g2"], p["be2"])
    return jnp.transpose(x, (0, 3, 1, 2))


if __name__ == "__main__":
    key = jax.random.PRNGKey(0)
    kx, kp = jax.random.split(key)
    channels = 4
    x = jax.random.normal(kx, (2, channels, 16, 16), jnp.float32)   # NCHW input
    params = init_residual_params(kp, channels)

    fwd = jax.jit(residual_forward)
    out = jax.block_until_ready(fwd(x, params))
    assert out.shape == x.shape and out.dtype == jnp.float32

    ref = jax.block_until_ready(_reference_forward(x, params))
    # Tolerance covers the deliberate bf16 MXU-operand / bf16 intermediate
    # quantization versus the pure-f32 reference.
    assert bool(jnp.allclose(out, ref, rtol=5e-2, atol=5e-2)), \
        "Pallas vs JAX reference mismatch"

    print("KERNEL_OK")
</pallas_src>

<mosaic_0001>
module attributes {stable_mosaic.version = 11 : i64} {
  func.func @_bn_lrelu_kernel(%arg0: i32, %arg1: memref<512x128xbf16, #tpu.memory_space<vmem>>, %arg2: memref<1x128xf32, #tpu.memory_space<vmem>>, %arg3: memref<1x128xf32, #tpu.memory_space<vmem>>, %arg4: memref<512x128xbf16, #tpu.memory_space<vmem>>) attributes {dimension_semantics = [#tpu.dimension_semantics<parallel>], iteration_bounds = array<i64: 1>, scalar_prefetch = 0 : i64, scratch_operands = 0 : i64, tpu.core_type = #tpu.core_type<tc>, window_params = [{transform_indices = @transform_0, window_bounds = array<i64: 512, 128>}, {pipeline_mode = #tpu.pipeline_mode<synchronous>, transform_indices = @transform_1, window_bounds = array<i64: 1, 128>}, {pipeline_mode = #tpu.pipeline_mode<synchronous>, transform_indices = @transform_2, window_bounds = array<i64: 1, 128>}, {transform_indices = @transform_3, window_bounds = array<i64: 512, 128>}]} {
    %c0 = arith.constant 0 : index
    %c0_0 = arith.constant 0 : index
    %0 = vector.load %arg1[%c0, %c0_0] : memref<512x128xbf16, #tpu.memory_space<vmem>>, vector<512x128xbf16>
    %1 = arith.extf %0 : vector<512x128xbf16> to vector<512x128xf32>
    %c0_1 = arith.constant 0 : index
    %c0_2 = arith.constant 0 : index
    %2 = vector.load %arg2[%c0_1, %c0_2] : memref<1x128xf32, #tpu.memory_space<vmem>>, vector<1x128xf32>
    %3 = vector.broadcast %2 : vector<1x128xf32> to vector<512x128xf32>
    %4 = arith.mulf %1, %3 : vector<512x128xf32>
    %c0_3 = arith.constant 0 : index
    %c0_4 = arith.constant 0 : index
    %5 = vector.load %arg3[%c0_3, %c0_4] : memref<1x128xf32, #tpu.memory_space<vmem>>, vector<1x128xf32>
    %6 = vector.broadcast %5 : vector<1x128xf32> to vector<512x128xf32>
    %7 = arith.addf %4, %6 : vector<512x128xf32>
    %cst = arith.constant 0.000000e+00 : f32
    %8 = vector.broadcast %cst : f32 to vector<512x128xf32>
    %9 = arith.cmpf oge, %7, %8 : vector<512x128xf32>
    %cst_5 = arith.constant 1.000000e-01 : f32
    %10 = vector.broadcast %cst_5 : f32 to vector<512x128xf32>
    %11 = arith.mulf %10, %7 : vector<512x128xf32>
    %12 = arith.select %9, %7, %11 : vector<512x128xi1>, vector<512x128xf32>
    %13 = arith.truncf %12 : vector<512x128xf32> to vector<512x128xbf16>
    %c0_6 = arith.constant 0 : index
    %c0_7 = arith.constant 0 : index
    %14 = vector.load %arg4[%c0_6, %c0_7] : memref<512x128xbf16, #tpu.memory_space<vmem>>, vector<512x128xbf16>
    tpu.vector_store %arg4[%c0_6, %c0_7], %13 {strides = array<i32>} : memref<512x128xbf16, #tpu.memory_space<vmem>>, vector<512x128xbf16>,
    return
  }
  func.func @transform_0(%arg0: i32) -> (i32, i32) {
    %c0_i32 = arith.constant 0 : i32
    %c0_i32_0 = arith.constant 0 : i32
    return %arg0, %c0_i32 : i32, i32
  }
  func.func @transform_1(%arg0: i32) -> (i32, i32) {
    %c0_i32 = arith.constant 0 : i32
    %c0_i32_0 = arith.constant 0 : i32
    %c0_i32_1 = arith.constant 0 : i32
    return %c0_i32, %c0_i32_0 : i32, i32
  }
  func.func @transform_2(%arg0: i32) -> (i32, i32) {
    %c0_i32 = arith.constant 0 : i32
    %c0_i32_0 = arith.constant 0 : i32
    %c0_i32_1 = arith.constant 0 : i32
    return %c0_i32, %c0_i32_0 : i32, i32
  }
  func.func @transform_3(%arg0: i32) -> (i32, i32) {
    %c0_i32 = arith.constant 0 : i32
    %c0_i32_0 = arith.constant 0 : i32
    return %arg0, %c0_i32 : i32, i32
  }
}

module attributes {stable_mosaic.version = 11 : i64} {
  func.func @_gemm_stats_kernel(%arg0: i32, %arg1: i32, %arg2: memref<512x128xbf16, #tpu.memory_space<vmem>>, %arg3: memref<128x128xbf16, #tpu.memory_space<vmem>>, %arg4: memref<512x128xbf16, #tpu.memory_space<vmem>>, %arg5: memref<1x2x128xf32, #tpu.memory_space<vmem>>, %arg6: memref<512x128xf32, #tpu.memory_space<vmem>>) attributes {dimension_semantics = [#tpu.dimension_semantics<parallel>, #tpu.dimension_semantics<arbitrary>], iteration_bounds = array<i64: 1, 1>, scalar_prefetch = 0 : i64, scratch_operands = 1 : i64, tpu.core_type = #tpu.core_type<tc>, window_params = [{transform_indices = @transform_0, window_bounds = array<i64: 512, 128>}, {transform_indices = @transform_1, window_bounds = array<i64: 128, 128>}, {transform_indices = @transform_2, window_bounds = array<i64: 512, 128>}, {transform_indices = @transform_3, window_bounds = array<i64: 1, 2, 128>}]} {
    %c0_i32 = arith.constant 0 : i32
    %0 = arith.cmpi eq, %arg1, %c0_i32 : i32
    %1 = arith.extui %0 : i1 to i32
    %c0_i32_0 = arith.constant 0 : i32
    %2 = arith.cmpi ne, %1, %c0_i32_0 : i32
    scf.if %2 {
      %cst_10 = arith.constant 0.000000e+00 : f32
      %12 = vector.broadcast %cst_10 : f32 to vector<512x128xf32>
      %c0_11 = arith.constant 0 : index
      %c0_12 = arith.constant 0 : index
      %13 = vector.load %arg6[%c0_11, %c0_12] : memref<512x128xf32, #tpu.memory_space<vmem>>, vector<512x128xf32>
      tpu.vector_store %arg6[%c0_11, %c0_12], %12 {strides = array<i32>} : memref<512x128xf32, #tpu.memory_space<vmem>>, vector<512x128xf32>,
    } else {
    }
    %c0 = arith.constant 0 : index
    %c0_1 = arith.constant 0 : index
    %3 = vector.load %arg6[%c0, %c0_1] : memref<512x128xf32, #tpu.memory_space<vmem>>, vector<512x128xf32>
    %c0_2 = arith.constant 0 : index
    %c0_3 = arith.constant 0 : index
    %4 = vector.load %arg2[%c0_2, %c0_3] : memref<512x128xbf16, #tpu.memory_space<vmem>>, vector<512x128xbf16>
    %c0_4 = arith.constant 0 : index
    %c0_5 = arith.constant 0 : index
    %5 = vector.load %arg3[%c0_4, %c0_5] : memref<128x128xbf16, #tpu.memory_space<vmem>>, vector<128x128xbf16>
    %cst = arith.constant dense<0.000000e+00> : vector<512x128xf32>
    %6 = tpu.matmul %4, %5, %cst {dimension_numbers = #tpu.dot_dimension_numbers<[1], [0], [0], [1], [0, 0, 1, 1], [], []>} : vector<512x128xbf16>, vector<128x128xbf16>, vector<512x128xf32> -> vector<512x128xf32>
    %7 = arith.addf %3, %6 : vector<512x128xf32>
    %c0_6 = arith.constant 0 : index
    %c0_7 = arith.constant 0 : index
    %8 = vector.load %arg6[%c0_6, %c0_7] : memref<512x128xf32, #tpu.memory_space<vmem>>, vector<512x128xf32>
    tpu.vector_store %arg6[%c0_6, %c0_7], %7 {strides = array<i32>} : memref<512x128xf32, #tpu.memory_space<vmem>>, vector<512x128xf32>,
    %c0_i32_8 = arith.constant 0 : i32
    %9 = arith.cmpi eq, %arg1, %c0_i32_8 : i32
    %10 = arith.extui %9 : i1 to i32
    %c0_i32_9 = arith.constant 0 : i32
    %11 = arith.cmpi ne, %10, %c0_i32_9 : i32
    scf.if %11 {
      %c0_10 = arith.constant 0 : index
      %c0_11 = arith.constant 0 : index
      %12 = vector.load %arg6[%c0_10, %c0_11] : memref<512x128xf32, #tpu.memory_space<vmem>>, vector<512x128xf32>
      %13 = arith.truncf %12 : vector<512x128xf32> to vector<512x128xbf16>
      %c0_12 = arith.constant 0 : index
      %c0_13 = arith.constant 0 : index
      %14 = vector.load %arg4[%c0_12, %c0_13] : memref<512x128xbf16, #tpu.memory_space<vmem>>, vector<512x128xbf16>
      tpu.vector_store %arg4[%c0_12, %c0_13], %13 {strides = array<i32>} : memref<512x128xbf16, #tpu.memory_space<vmem>>, vector<512x128xbf16>,
      %cst_14 = arith.constant dense<0.000000e+00> : vector<128xf32>
      %15 = vector.multi_reduction <add>, %12, %cst_14 [0] : vector<512x128xf32> to vector<128xf32>
      %16 = vector.shape_cast %15 : vector<128xf32> to vector<1x128xf32>
      %17 = arith.mulf %12, %12 : vector<512x128xf32>
      %cst_15 = arith.constant dense<0.000000e+00> : vector<128xf32>
      %18 = vector.multi_reduction <add>, %17, %cst_15 [0] : vector<512x128xf32> to vector<128xf32>
      %19 = vector.shape_cast %18 : vector<128xf32> to vector<1x128xf32>
      %20 = tpu.concatenate %16, %19 in 0 : vector<1x128xf32>, vector<1x128xf32> -> vector<2x128xf32>
      %21 = vector.shape_cast %20 : vector<2x128xf32> to vector<1x2x128xf32>
      %c0_16 = arith.constant 0 : index
      %c0_17 = arith.constant 0 : index
      %c0_18 = arith.constant 0 : index
      %22 = vector.load %arg5[%c0_16, %c0_17, %c0_18] : memref<1x2x128xf32, #tpu.memory_space<vmem>>, vector<1x2x128xf32>
      tpu.vector_store %arg5[%c0_16, %c0_17, %c0_18], %21 {strides = array<i32>} : memref<1x2x128xf32, #tpu.memory_space<vmem>>, vector<1x2x128xf32>,
    } else {
    }
    return
  }
  func.func @transform_0(%arg0: i32, %arg1: i32) -> (i32, i32) {
    %c0_i32 = arith.constant 0 : i32
    return %arg0, %arg1 : i32, i32
  }
  func.func @transform_1(%arg0: i32, %arg1: i32) -> (i32, i32) {
    %c0_i32 = arith.constant 0 : i32
    %c0_i32_0 = arith.constant 0 : i32
    return %arg1, %c0_i32 : i32, i32
  }
  func.func @transform_2(%arg0: i32, %arg1: i32) -> (i32, i32) {
    %c0_i32 = arith.constant 0 : i32
    %c0_i32_0 = arith.constant 0 : i32
    return %arg0, %c0_i32 : i32, i32
  }
  func.func @transform_3(%arg0: i32, %arg1: i32) -> (i32, i32, i32) {
    %c0_i32 = arith.constant 0 : i32
    %c0_i32_0 = arith.constant 0 : i32
    %c0_i32_1 = arith.constant 0 : i32
    return %arg0, %c0_i32, %c0_i32_0 : i32, i32, i32
  }
}

module attributes {stable_mosaic.version = 11 : i64} {
  func.func @_bn_lrelu_kernel(%arg0: i32, %arg1: memref<512x128xbf16, #tpu.memory_space<vmem>>, %arg2: memref<1x128xf32, #tpu.memory_space<vmem>>, %arg3: memref<1x128xf32, #tpu.memory_space<vmem>>, %arg4: memref<512x128xf32, #tpu.memory_space<vmem>>) attributes {dimension_semantics = [#tpu.dimension_semantics<parallel>], iteration_bounds = array<i64: 1>, scalar_prefetch = 0 : i64, scratch_operands = 0 : i64, tpu.core_type = #tpu.core_type<tc>, window_params = [{transform_indices = @transform_0, window_bounds = array<i64: 512, 128>}, {pipeline_mode = #tpu.pipeline_mode<synchronous>, transform_indices = @transform_1, window_bounds = array<i64: 1, 128>}, {pipeline_mode = #tpu.pipeline_mode<synchronous>, transform_indices = @transform_2, window_bounds = array<i64: 1, 128>}, {transform_indices = @transform_3, window_bounds = array<i64: 512, 128>}]} {
    %c0 = arith.constant 0 : index
    %c0_0 = arith.constant 0 : index
    %0 = vector.load %arg1[%c0, %c0_0] : memref<512x128xbf16, #tpu.memory_space<vmem>>, vector<512x128xbf16>
    %1 = arith.extf %0 : vector<512x128xbf16> to vector<512x128xf32>
    %c0_1 = arith.constant 0 : index
    %c0_2 = arith.constant 0 : index
    %2 = vector.load %arg2[%c0_1, %c0_2] : memref<1x128xf32, #tpu.memory_space<vmem>>, vector<1x128xf32>
    %3 = vector.broadcast %2 : vector<1x128xf32> to vector<512x128xf32>
    %4 = arith.mulf %1, %3 : vector<512x128xf32>
    %c0_3 = arith.constant 0 : index
    %c0_4 = arith.constant 0 : index
    %5 = vector.load %arg3[%c0_3, %c0_4] : memref<1x128xf32, #tpu.memory_space<vmem>>, vector<1x128xf32>
    %6 = vector.broadcast %5 : vector<1x128xf32> to vector<512x128xf32>
    %7 = arith.addf %4, %6 : vector<512x128xf32>
    %cst = arith.constant 0.000000e+00 : f32
    %8 = vector.broadcast %cst : f32 to vector<512x128xf32>
    %9 = arith.cmpf oge, %7, %8 : vector<512x128xf32>
    %cst_5 = arith.constant 1.000000e-01 : f32
    %10 = vector.broadcast %cst_5 : f32 to vector<512x128xf32>
    %11 = arith.mulf %10, %7 : vector<512x128xf32>
    %12 = arith.select %9, %7, %11 : vector<512x128xi1>, vector<512x128xf32>
    %c0_6 = arith.constant 0 : index
    %c0_7 = arith.constant 0 : index
    %13 = vector.load %arg4[%c0_6, %c0_7] : memref<512x128xf32, #tpu.memory_space<vmem>>, vector<512x128xf32>
    tpu.vector_store %arg4[%c0_6, %c0_7], %12 {strides = array<i32>} : memref<512x128xf32, #tpu.memory_space<vmem>>, vector<512x128xf32>,
    return
  }
  func.func @transform_0(%arg0: i32) -> (i32, i32) {
    %c0_i32 = arith.constant 0 : i32
    %c0_i32_0 = arith.constant 0 : i32
    return %arg0, %c0_i32 : i32, i32
  }
  func.func @transform_1(%arg0: i32) -> (i32, i32) {
    %c0_i32 = arith.constant 0 : i32
    %c0_i32_0 = arith.constant 0 : i32
    %c0_i32_1 = arith.constant 0 : i32
    return %c0_i32, %c0_i32_0 : i32, i32
  }
  func.func @transform_2(%arg0: i32) -> (i32, i32) {
    %c0_i32 = arith.constant 0 : i32
    %c0_i32_0 = arith.constant 0 : i32
    %c0_i32_1 = arith.constant 0 : i32
    return %c0_i32, %c0_i32_0 : i32, i32
  }
  func.func @transform_3(%arg0: i32) -> (i32, i32) {
    %c0_i32 = arith.constant 0 : i32
    %c0_i32_0 = arith.constant 0 : i32
    return %arg0, %c0_i32 : i32, i32
  }
}

</mosaic_0001>

<bundles_post_ra>
// kernel: residual_forward.5
= control target key start
LH: loop header
LB: loop body
LE: loop exit
PB: predicated region body
PF: predicated region fallthrough
CT: control target
= control target key end

     0   :  { %s1631_s0 = inlined_call_operand.vmem [shape: bf16[512,128], index: 0, kind: input, shape index: {}]   ;;  %s1632_s1 = inlined_call_operand.vmem [shape: f32[1,128], index: 1, kind: input, shape index: {}]   ;;  %s1633_s2 = inlined_call_operand.vmem [shape: f32[1,128], index: 2, kind: input, shape index: {}]   ;;  %s1634_s3 = inlined_call_operand.vmem [shape: bf16[512,128], index: 3, kind: output, shape index: {}]  }
   0x1   :  { %v931_v0 = vld [vmem:[%s1631_s0] sm:$0xff]   ;;  %v1218_v4 = vld [vmem:[%s1631_s0 + $0x8] sm:$0xff]   ;;  %v1219_v5 = vld [vmem:[%s1631_s0 + $0x10] sm:$0xff]  }
   0x2   :  { %v1306_v1 = vld [vmem:[%s1632_s1] ss:$0 sm:$0xff]  ;;  %v932_v2 = vunpack.c.l.bf16 %v931_v0  ;;  %v933_v3 = vunpack.c.h.bf16 %v931_v0  ;;  %v1220_v6 = vld [vmem:[%s1631_s0 + $0x18] sm:$0xff]   ;;  %v936_v8 = vunpack.c.l.bf16 %v1218_v4  ;;  %v937_v9 = vunpack.c.h.bf16 %v1218_v4  ;;  %v1222_v35 = vld [vmem:[%s1631_s0 + $0x28] sm:$0xff]  }
   0x3   :  { %v1320_v7 = vld [vmem:[%s1633_s2] ss:$0 sm:$0xff]  ;;  %v940_v10 = vunpack.c.l.bf16 %v1219_v5  ;;  %v941_v11 = vunpack.c.h.bf16 %v1219_v5  ;;  %v944_v14 = vunpack.c.l.bf16 %v1220_v6  ;;  %v945_v15 = vunpack.c.h.bf16 %v1220_v6  ;;  %v1223_v48 = vld [vmem:[%s1631_s0 + $0x30] sm:$0xff]   ;;  %v1224_v4 = vld [vmem:[%s1631_s0 + $0x38] sm:$0xff]  }
   0x4   :  { %v149_v12 = vmul.f32 %v932_v2, %v1306_v1  ;;  %v150_v13 = vmul.f32 %v933_v3, %v1306_v1  ;;  %v151_v16 = vmul.f32 %v936_v8, %v1306_v1  ;;  %v152_v17 = vmul.f32 %v937_v9, %v1306_v1  ;;  %v1221_v34 = vld [vmem:[%s1631_s0 + $0x20] sm:$0xff]  }
   0x5   :  { %v153_v18 = vmul.f32 %v940_v10, %v1306_v1  ;;  %v154_v19 = vmul.f32 %v941_v11, %v1306_v1  ;;  %v155_v22 = vmul.f32 %v944_v14, %v1306_v1  ;;  %v156_v23 = vmul.f32 %v945_v15, %v1306_v1  ;;  %v1225_v15 = vld [vmem:[%s1631_s0 + $0x40] sm:$0xff]  }
   0x6   :  { %v220_v20 = vadd.f32 %v1320_v7, %v149_v12  ;;  %v221_v21 = vadd.f32 %v1320_v7, %v150_v13  ;;  %v222_v24 = vadd.f32 %v1320_v7, %v151_v16  ;;  %v223_v25 = vadd.f32 %v1320_v7, %v152_v17 }
   0x7   :  { %v224_v26 = vadd.f32 %v1320_v7, %v153_v18  ;;  %v225_v27 = vadd.f32 %v1320_v7, %v154_v19  ;;  %v226_v42 = vadd.f32 %v1320_v7, %v155_v22  ;;  %v227_v43 = vadd.f32 %v1320_v7, %v156_v23 }
   0x8   :  { %vm284_vm0 = vcmp.ge.f32.partialorder %v220_v20, 0.0  ;;  %vm285_vm1 = vcmp.ge.f32.partialorder %v221_v21, 0.0  ;;  %v348_v28 = vmul.f32 0.1, %v220_v20  ;;  %v349_v29 = vmul.f32 0.1, %v221_v21 }
   0x9   :  { %vm286_vm2 = vcmp.ge.f32.partialorder %v222_v24, 0.0  ;;  %vm287_vm3 = vcmp.ge.f32.partialorder %v223_v25, 0.0  ;;  %v350_v30 = vmul.f32 0.1, %v222_v24  ;;  %v351_v31 = vmul.f32 0.1, %v223_v25 }
   0xa   :  { %v412_v32 = vsel %vm284_vm0, %v220_v20, %v348_v28  ;;  %v413_v33 = vsel %vm285_vm1, %v221_v21, %v349_v29  ;;  %vm288_vm4 = vcmp.ge.f32.partialorder %v224_v26, 0.0  ;;  %vm289_vm5 = vcmp.ge.f32.partialorder %v225_v27, 0.0 }
   0xb   :  { %v1061_v36 = vpack.c.bf16 %v413_v33, %v412_v32  ;;  %v414_v37 = vsel %vm286_vm2, %v222_v24, %v350_v30  ;;  %v415_v38 = vsel %vm287_vm3, %v223_v25, %v351_v31  ;;  %v352_v39 = vmul.f32 0.1, %v224_v26 }
   0xc   :  { %v1066_v40 = vpack.c.bf16 %v415_v38, %v414_v37  ;;  %v353_v41 = vmul.f32 0.1, %v225_v27  ;;  %v948_v45 = vunpack.c.l.bf16 %v1221_v34  ;;  %v949_v46 = vunpack.c.h.bf16 %v1221_v34 }
   0xd   :  { %1062 = vst [vmem:[%s1634_s3] sm:$0xff] %v1061_v36   ;;  %v416_v44 = vsel %vm288_vm4, %v224_v26, %v352_v39  ;;  %v952_v47 = vunpack.c.l.bf16 %v1222_v35  ;;  %vm290_vm6 = vcmp.ge.f32.partialorder %v226_v42, 0.0  ;;  %vm291_vm7 = vcmp.ge.f32.partialorder %v227_v43, 0.0  ;;  %v1226_v26 = vld [vmem:[%s1631_s0 + $0x48] sm:$0xff]  }
   0xe   :  { %1249 = vst [vmem:[%s1634_s3 + $0x8] sm:$0xff] %v1066_v40   ;;  %v417_v49 = vsel %vm289_vm5, %v225_v27, %v353_v41  ;;  %v354_v50 = vmul.f32 0.1, %v226_v42  ;;  %v355_v52 = vmul.f32 0.1, %v227_v43  ;;  %v157_v53 = vmul.f32 %v948_v45, %v1306_v1  ;;  %v1227_v27 = vld [vmem:[%s1631_s0 + $0x50] sm:$0xff]  }
   0xf   :  { %v1071_v51 = vpack.c.bf16 %v417_v49, %v416_v44  ;;  %v158_v54 = vmul.f32 %v949_v46, %v1306_v1  ;;  %v953_v56 = vunpack.c.h.bf16 %v1222_v35  ;;  %v159_v57 = vmul.f32 %v952_v47, %v1306_v1 }
  0x10   :  { %v418_v55 = vsel %vm290_vm6, %v226_v42, %v354_v50  ;;  %v956_v58 = vunpack.c.l.bf16 %v1223_v48  ;;  %v419_v59 = vsel %vm291_vm7, %v227_v43, %v355_v52  ;;  %v228_v60 = vadd.f32 %v1320_v7, %v157_v53 }
  0x11   :  { %1250 = vst [vmem:[%s1634_s3 + $0x10] sm:$0xff] %v1071_v51   ;;  %v229_v61 = vadd.f32 %v1320_v7, %v158_v54  ;;  %v957_v62 = vunpack.c.h.bf16 %v1223_v48  ;;  %v1076_v63 = vpack.c.bf16 %v419_v59, %v418_v55  ;;  %v160_v0 = vmul.f32 %v953_v56, %v1306_v1  ;;  %v1228_v55 = vld [vmem:[%s1631_s0 + $0x58] sm:$0xff]  }
  0x12   :  { %v230_v2 = vadd.f32 %v1320_v7, %v159_v57  ;;  %v161_v3 = vmul.f32 %v956_v58, %v1306_v1  ;;  %vm292_vm8 = vcmp.ge.f32.partialorder %v228_v60, 0.0  ;;  %v356_v5 = vmul.f32 0.1, %v228_v60 }
  0x13   :  { %vm293_vm9 = vcmp.ge.f32.partialorder %v229_v61, 0.0  ;;  %v357_v6 = vmul.f32 0.1, %v229_v61  ;;  %1251 = vst [vmem:[%s1634_s3 + $0x18] sm:$0xff] %v1076_v63   ;;  %v231_v8 = vadd.f32 %v1320_v7, %v160_v0  ;;  %v162_v10 = vmul.f32 %v957_v62, %v1306_v1 }
  0x14   :  { %vm294_vm10 = vcmp.ge.f32.partialorder %v230_v2, 0.0  ;;  %v358_v9 = vmul.f32 0.1, %v230_v2  ;;  %v420_v11 = vsel %vm292_vm8, %v228_v60, %v356_v5  ;;  %v232_v13 = vadd.f32 %v1320_v7, %v161_v3  ;;  %v1229_v60 = vld [vmem:[%s1631_s0 + $0x60] sm:$0xff]  }
  0x15   :  { %v421_v12 = vsel %vm293_vm9, %v229_v61, %v357_v6  ;;  %v960_v14 = vunpack.c.l.bf16 %v1224_v4  ;;  %vm295_vm11 = vcmp.ge.f32.partialorder %v231_v8, 0.0  ;;  %v359_v17 = vmul.f32 0.1, %v231_v8 }
  0x16   :  { %v1081_v16 = vpack.c.bf16 %v421_v12, %v420_v11  ;;  %v422_v18 = vsel %vm294_vm10, %v230_v2, %v358_v9  ;;  %v233_v19 = vadd.f32 %v1320_v7, %v162_v10  ;;  %vm296_vm12 = vcmp.ge.f32.partialorder %v232_v13, 0.0  ;;  %v1230_v9 = vld [vmem:[%s1631_s0 + $0x68] sm:$0xff]  }
  0x17   :  { %v360_v20 = vmul.f32 0.1, %v232_v13  ;;  %v961_v21 = vunpack.c.h.bf16 %v1224_v4  ;;  %v423_v22 = vsel %vm295_vm11, %v231_v8, %v359_v17  ;;  %v163_v23 = vmul.f32 %v960_v14, %v1306_v1 }
  0x18   :  { %1252 = vst [vmem:[%s1634_s3 + $0x20] sm:$0xff] %v1081_v16   ;;  %v964_v24 = vunpack.c.l.bf16 %v1225_v15  ;;  %v965_v25 = vunpack.c.h.bf16 %v1225_v15  ;;  %v1086_v28 = vpack.c.bf16 %v423_v22, %v422_v18  ;;  %vm297_vm13 = vcmp.ge.f32.partialorder %v233_v19, 0.0 }
  0x19   :  { %v361_v29 = vmul.f32 0.1, %v233_v19  ;;  %v424_v30 = vsel %vm296_vm12, %v232_v13, %v360_v20  ;;  %v164_v31 = vmul.f32 %v961_v21, %v1306_v1  ;;  %v234_v32 = vadd.f32 %v1320_v7, %v163_v23 }
  0x1a   :  { %v165_v33 = vmul.f32 %v964_v24, %v1306_v1  ;;  %v166_v34 = vmul.f32 %v965_v25, %v1306_v1  ;;  %1253 = vst [vmem:[%s1634_s3 + $0x28] sm:$0xff] %v1086_v28   ;;  %v968_v36 = vunpack.c.l.bf16 %v1226_v26  ;;  %v969_v37 = vunpack.c.h.bf16 %v1226_v26  ;;  %v1231_v28 = vld [vmem:[%s1631_s0 + $0x70] sm:$0xff]  }
  0x1b   :  { %v425_v35 = vsel %vm297_vm13, %v233_v19, %v361_v29  ;;  %v972_v38 = vunpack.c.l.bf16 %v1227_v27  ;;  %v235_v40 = vadd.f32 %v1320_v7, %v164_v31  ;;  %vm298_vm14 = vcmp.ge.f32.partialorder %v234_v32, 0.0 }
  0x1c   :  { %v1091_v39 = vpack.c.bf16 %v425_v35, %v424_v30  ;;  %v362_v41 = vmul.f32 0.1, %v234_v32  ;;  %v236_v42 = vadd.f32 %v1320_v7, %v165_v33  ;;  %v237_v43 = vadd.f32 %v1320_v7, %v166_v34 }
  0x1d   :  { %v167_v44 = vmul.f32 %v968_v36, %v1306_v1  ;;  %v168_v45 = vmul.f32 %v969_v37, %v1306_v1  ;;  %vm299_vm15 = vcmp.ge.f32.partialorder %v235_v40, 0.0  ;;  %v363_v46 = vmul.f32 0.1, %v235_v40  ;;  %v1232_v37 = vld [vmem:[%s1631_s0 + $0x78] sm:$0xff]  }
  0x1e   :  { %1254 = vst [vmem:[%s1634_s3 + $0x30] sm:$0xff] %v1091_v39   ;;  %v426_v47 = vsel %vm298_vm14, %v234_v32, %v362_v41  ;;  %v973_v48 = vunpack.c.h.bf16 %v1227_v27  ;;  %vm300_vm0 = vcmp.ge.f32.partialorder %v236_v42, 0.0  ;;  %vm301_vm1 = vcmp.ge.f32.partialorder %v237_v43, 0.0 }
  0x1f   :  { %v364_v49 = vmul.f32 0.1, %v236_v42  ;;  %v365_v50 = vmul.f32 0.1, %v237_v43  ;;  %v427_v51 = vsel %vm299_vm15, %v235_v40, %v363_v46  ;;  %v238_v52 = vadd.f32 %v1320_v7, %v167_v44 }
  0x20   :  { %v239_v53 = vadd.f32 %v1320_v7, %v168_v45  ;;  %v169_v54 = vmul.f32 %v972_v38, %v1306_v1  ;;  %v1096_v56 = vpack.c.bf16 %v427_v51, %v426_v47  ;;  %v170_v59 = vmul.f32 %v973_v48, %v1306_v1 }
  0x21   :  { %v428_v57 = vsel %vm300_vm0, %v236_v42, %v364_v49  ;;  %v429_v58 = vsel %vm301_vm1, %v237_v43, %v365_v50  ;;  %vm302_vm2 = vcmp.ge.f32.partialorder %v238_v52, 0.0  ;;  %v366_v62 = vmul.f32 0.1, %v238_v52  ;;  %v1233_v42 = vld [vmem:[%s1631_s0 + $0x80] sm:$0xff]   ;;  %v1234_v50 = vld [vmem:[%s1631_s0 + $0x88] sm:$0xff]  }
  0x22   :  { %v1101_v61 = vpack.c.bf16 %v429_v58, %v428_v57  ;;  %vm303_vm3 = vcmp.ge.f32.partialorder %v239_v53, 0.0  ;;  %1255 = vst [vmem:[%s1634_s3 + $0x38] sm:$0xff] %v1096_v56   ;;  %v367_v63 = vmul.f32 0.1, %v239_v53  ;;  %v240_v0 = vadd.f32 %v1320_v7, %v169_v54 }
  0x23   :  { %v241_v2 = vadd.f32 %v1320_v7, %v170_v59  ;;  %v976_v3 = vunpack.c.l.bf16 %v1228_v55  ;;  %v430_v4 = vsel %vm302_vm2, %v238_v52, %v366_v62  ;;  %v977_v5 = vunpack.c.h.bf16 %v1228_v55 }
  0x24   :  { %1256 = vst [vmem:[%s1634_s3 + $0x40] sm:$0xff] %v1101_v61   ;;  %v980_v6 = vunpack.c.l.bf16 %v1229_v60  ;;  %v981_v8 = vunpack.c.h.bf16 %v1229_v60  ;;  %v431_v10 = vsel %vm303_vm3, %v239_v53, %v367_v63  ;;  %vm304_vm4 = vcmp.ge.f32.partialorder %v240_v0, 0.0 }
  0x25   :  { %vm305_vm5 = vcmp.ge.f32.partialorder %v241_v2, 0.0  ;;  %v368_v11 = vmul.f32 0.1, %v240_v0  ;;  %v1106_v12 = vpack.c.bf16 %v431_v10, %v430_v4  ;;  %v369_v13 = vmul.f32 0.1, %v241_v2 }
  0x26   :  { %v171_v14 = vmul.f32 %v976_v3, %v1306_v1  ;;  %v172_v15 = vmul.f32 %v977_v5, %v1306_v1  ;;  %v173_v17 = vmul.f32 %v980_v6, %v1306_v1  ;;  %v174_v18 = vmul.f32 %v981_v8, %v1306_v1 }
  0x27   :  { %v432_v16 = vsel %vm304_vm4, %v240_v0, %v368_v11  ;;  %v984_v19 = vunpack.c.l.bf16 %v1230_v9  ;;  %1257 = vst [vmem:[%s1634_s3 + $0x48] sm:$0xff] %v1106_v12   ;;  %v433_v20 = vsel %vm305_vm5, %v241_v2, %v369_v13  ;;  %v985_v23 = vunpack.c.h.bf16 %v1230_v9 }
  0x28   :  { %v242_v21 = vadd.f32 %v1320_v7, %v171_v14  ;;  %v243_v22 = vadd.f32 %v1320_v7, %v172_v15  ;;  %v1111_v24 = vpack.c.bf16 %v433_v20, %v432_v16  ;;  %v244_v25 = vadd.f32 %v1320_v7, %v173_v17  ;;  %v1235_v15 = vld [vmem:[%s1631_s0 + $0x90] sm:$0xff]   ;;  %v1236_v20 = vld [vmem:[%s1631_s0 + $0x98] sm:$0xff]  }
  0x29   :  { %v245_v26 = vadd.f32 %v1320_v7, %v174_v18  ;;  %v175_v27 = vmul.f32 %v984_v19, %v1306_v1  ;;  %v176_v35 = vmul.f32 %v985_v23, %v1306_v1  ;;  %v988_v41 = vunpack.c.l.bf16 %v1231_v28 }
  0x2a   :  { %vm306_vm6 = vcmp.ge.f32.partialorder %v242_v21, 0.0  ;;  %vm307_vm7 = vcmp.ge.f32.partialorder %v243_v22, 0.0  ;;  %v370_v29 = vmul.f32 0.1, %v242_v21  ;;  %v371_v30 = vmul.f32 0.1, %v243_v22 }
  0x2b   :  { %1258 = vst [vmem:[%s1634_s3 + $0x50] sm:$0xff] %v1111_v24   ;;  %vm308_vm8 = vcmp.ge.f32.partialorder %v244_v25, 0.0  ;;  %vm309_vm9 = vcmp.ge.f32.partialorder %v245_v26, 0.0  ;;  %v372_v31 = vmul.f32 0.1, %v244_v25  ;;  %v246_v36 = vadd.f32 %v1320_v7, %v175_v27 }
  0x2c   :  { %v373_v32 = vmul.f32 0.1, %v245_v26  ;;  %v434_v33 = vsel %vm306_vm6, %v242_v21, %v370_v29  ;;  %v435_v34 = vsel %vm307_vm7, %v243_v22, %v371_v30  ;;  %v247_v44 = vadd.f32 %v1320_v7, %v176_v35  ;;  %v1237_v21 = vld [vmem:[%s1631_s0 + $0xa0] sm:$0xff]  }
  0x2d   :  { %v1116_v38 = vpack.c.bf16 %v435_v34, %v434_v33  ;;  %v436_v39 = vsel %vm308_vm8, %v244_v25, %v372_v31  ;;  %vm310_vm10 = vcmp.ge.f32.partialorder %v246_v36, 0.0  ;;  %v374_v45 = vmul.f32 0.1, %v246_v36 }
  0x2e   :  { %v437_v40 = vsel %vm309_vm9, %v245_v26, %v373_v32  ;;  %v989_v46 = vunpack.c.h.bf16 %v1231_v28  ;;  %v177_v47 = vmul.f32 %v988_v41, %v1306_v1  ;;  %v992_v48 = vunpack.c.l.bf16 %v1232_v37 }
  0x2f   :  { %v1121_v43 = vpack.c.bf16 %v437_v40, %v436_v39  ;;  %1259 = vst [vmem:[%s1634_s3 + $0x58] sm:$0xff] %v1116_v38   ;;  %v993_v49 = vunpack.c.h.bf16 %v1232_v37  ;;  %vm311_vm11 = vcmp.ge.f32.partialorder %v247_v44, 0.0  ;;  %v375_v51 = vmul.f32 0.1, %v247_v44  ;;  %v1238_v40 = vld [vmem:[%s1631_s0 + $0xa8] sm:$0xff]  }
  0x30   :  { %v438_v52 = vsel %vm310_vm10, %v246_v36, %v374_v45  ;;  %v996_v53 = vunpack.c.l.bf16 %v1233_v42  ;;  %v178_v54 = vmul.f32 %v989_v46, %v1306_v1  ;;  %v248_v55 = vadd.f32 %v1320_v7, %v177_v47 }
  0x31   :  { %1260 = vst [vmem:[%s1634_s3 + $0x60] sm:$0xff] %v1121_v43   ;;  %v179_v56 = vmul.f32 %v992_v48, %v1306_v1  ;;  %v180_v57 = vmul.f32 %v993_v49, %v1306_v1  ;;  %v439_v58 = vsel %vm311_vm11, %v247_v44, %v375_v51  ;;  %v997_v59 = vunpack.c.h.bf16 %v1233_v42 }
  0x32   :  { %v181_v60 = vmul.f32 %v996_v53, %v1306_v1  ;;  %v1000_v61 = vunpack.c.l.bf16 %v1234_v50  ;;  %v1126_v62 = vpack.c.bf16 %v439_v58, %v438_v52  ;;  %v249_v63 = vadd.f32 %v1320_v7, %v178_v54 }
  0x33   :  { %vm312_vm12 = vcmp.ge.f32.partialorder %v248_v55, 0.0  ;;  %v376_v0 = vmul.f32 0.1, %v248_v55  ;;  %v250_v2 = vadd.f32 %v1320_v7, %v179_v56  ;;  %v251_v3 = vadd.f32 %v1320_v7, %v180_v57 }
  0x34   :  { %v182_v4 = vmul.f32 %v997_v59, %v1306_v1  ;;  %v252_v5 = vadd.f32 %v1320_v7, %v181_v60  ;;  %1261 = vst [vmem:[%s1634_s3 + $0x68] sm:$0xff] %v1126_v62   ;;  %vm313_vm13 = vcmp.ge.f32.partialorder %v249_v63, 0.0  ;;  %v377_v6 = vmul.f32 0.1, %v249_v63 }
  0x35   :  { %v440_v8 = vsel %vm312_vm12, %v248_v55, %v376_v0  ;;  %v1001_v9 = vunpack.c.h.bf16 %v1234_v50  ;;  %vm314_vm14 = vcmp.ge.f32.partialorder %v250_v2, 0.0  ;;  %vm315_vm15 = vcmp.ge.f32.partialorder %v251_v3, 0.0  ;;  %v1239_v0 = vld [vmem:[%s1631_s0 + $0xb0] sm:$0xff]  }
  0x36   :  { %v378_v10 = vmul.f32 0.1, %v250_v2  ;;  %v379_v11 = vmul.f32 0.1, %v251_v3  ;;  %v441_v12 = vsel %vm313_vm13, %v249_v63, %v377_v6  ;;  %v253_v13 = vadd.f32 %v1320_v7, %v182_v4 }
  0x37   :  { %vm316_vm0 = vcmp.ge.f32.partialorder %v252_v5, 0.0  ;;  %v380_v14 = vmul.f32 0.1, %v252_v5  ;;  %v1131_v16 = vpack.c.bf16 %v441_v12, %v440_v8  ;;  %v183_v19 = vmul.f32 %v1000_v61, %v1306_v1 }
  0x38   :  { %v442_v17 = vsel %vm314_vm14, %v250_v2, %v378_v10  ;;  %v443_v18 = vsel %vm315_vm15, %v251_v3, %v379_v11  ;;  %vm317_vm1 = vcmp.ge.f32.partialorder %v253_v13, 0.0  ;;  %v381_v23 = vmul.f32 0.1, %v253_v13  ;;  %v1240_v2 = vld [vmem:[%s1631_s0 + $0xb8] sm:$0xff]  }
  0x39   :  { %v1136_v22 = vpack.c.bf16 %v443_v18, %v442_v17  ;;  %v444_v24 = vsel %vm316_vm0, %v252_v5, %v380_v14  ;;  %1262 = vst [vmem:[%s1634_s3 + $0x70] sm:$0xff] %v1131_v16   ;;  %v184_v25 = vmul.f32 %v1001_v9, %v1306_v1  ;;  %v254_v26 = vadd.f32 %v1320_v7, %v183_v19  ;;  %v1241_v18 = vld [vmem:[%s1631_s0 + $0xc0] sm:$0xff]  }
  0x3a   :  { %v1004_v27 = vunpack.c.l.bf16 %v1235_v15  ;;  %v1005_v28 = vunpack.c.h.bf16 %v1235_v15  ;;  %v445_v29 = vsel %vm317_vm1, %v253_v13, %v381_v23  ;;  %v1008_v30 = vunpack.c.l.bf16 %v1236_v20 }
  0x3b   :  { %1263 = vst [vmem:[%s1634_s3 + $0x78] sm:$0xff] %v1136_v22   ;;  %v1009_v31 = vunpack.c.h.bf16 %v1236_v20  ;;  %v1012_v32 = vunpack.c.l.bf16 %v1237_v21  ;;  %v1141_v33 = vpack.c.bf16 %v445_v29, %v444_v24  ;;  %v255_v34 = vadd.f32 %v1320_v7, %v184_v25 }
  0x3c   :  { %vm318_vm2 = vcmp.ge.f32.partialorder %v254_v26, 0.0  ;;  %v382_v35 = vmul.f32 0.1, %v254_v26  ;;  %v185_v36 = vmul.f32 %v1004_v27, %v1306_v1  ;;  %v186_v37 = vmul.f32 %v1005_v28, %v1306_v1 }
  0x3d   :  { %v187_v38 = vmul.f32 %v1008_v30, %v1306_v1  ;;  %v188_v39 = vmul.f32 %v1009_v31, %v1306_v1  ;;  %1264 = vst [vmem:[%s1634_s3 + $0x80] sm:$0xff] %v1141_v33   ;;  %vm319_vm3 = vcmp.ge.f32.partialorder %v255_v34, 0.0  ;;  %v383_v41 = vmul.f32 0.1, %v255_v34 }
  0x3e   :  { %v446_v42 = vsel %vm318_vm2, %v254_v26, %v382_v35  ;;  %v1013_v43 = vunpack.c.h.bf16 %v1237_v21  ;;  %v256_v44 = vadd.f32 %v1320_v7, %v185_v36  ;;  %v257_v45 = vadd.f32 %v1320_v7, %v186_v37  ;;  %v1242_v36 = vld [vmem:[%s1631_s0 + $0xc8] sm:$0xff]  }
  0x3f   :  { %v258_v46 = vadd.f32 %v1320_v7, %v187_v38  ;;  %v259_v47 = vadd.f32 %v1320_v7, %v188_v39  ;;  %v447_v48 = vsel %vm319_vm3, %v255_v34, %v383_v41  ;;  %v189_v49 = vmul.f32 %v1012_v32, %v1306_v1 }
  0x40   :  { %v190_v50 = vmul.f32 %v1013_v43, %v1306_v1  ;;  %v1016_v51 = vunpack.c.l.bf16 %v1238_v40  ;;  %v1146_v52 = vpack.c.bf16 %v447_v48, %v446_v42  ;;  %vm320_vm4 = vcmp.ge.f32.partialorder %v256_v44, 0.0  ;;  %v1243_v42 = vld [vmem:[%s1631_s0 + $0xd0] sm:$0xff]  }
  0x41   :  { %vm321_vm5 = vcmp.ge.f32.partialorder %v257_v45, 0.0  ;;  %v384_v53 = vmul.f32 0.1, %v256_v44  ;;  %v385_v54 = vmul.f32 0.1, %v257_v45  ;;  %vm322_vm6 = vcmp.ge.f32.partialorder %v258_v46, 0.0 }
  0x42   :  { %vm323_vm7 = vcmp.ge.f32.partialorder %v259_v47, 0.0  ;;  %v386_v55 = vmul.f32 0.1, %v258_v46  ;;  %1265 = vst [vmem:[%s1634_s3 + $0x88] sm:$0xff] %v1146_v52   ;;  %v387_v57 = vmul.f32 0.1, %v259_v47  ;;  %v260_v58 = vadd.f32 %v1320_v7, %v189_v49 }
  0x43   :  { %v448_v56 = vsel %vm320_vm4, %v256_v44, %v384_v53  ;;  %v261_v59 = vadd.f32 %v1320_v7, %v190_v50  ;;  %v449_v60 = vsel %vm321_vm5, %v257_v45, %v385_v54  ;;  %v1017_v62 = vunpack.c.h.bf16 %v1238_v40 }
  0x44   :  { %v450_v61 = vsel %vm322_vm6, %v258_v46, %v386_v55  ;;  %v191_v63 = vmul.f32 %v1016_v51, %v1306_v1  ;;  %v1151_v3 = vpack.c.bf16 %v449_v60, %v448_v56  ;;  %v451_v4 = vsel %vm323_vm7, %v259_v47, %v387_v57  ;;  %v1244_v55 = vld [vmem:[%s1631_s0 + $0xd8] sm:$0xff]  }
  0x45   :  { %vm324_vm8 = vcmp.ge.f32.partialorder %v260_v58, 0.0  ;;  %vm325_vm9 = vcmp.ge.f32.partialorder %v261_v59, 0.0  ;;  %v1156_v5 = vpack.c.bf16 %v451_v4, %v450_v61  ;;  %v388_v6 = vmul.f32 0.1, %v260_v58 }
  0x46   :  { %v389_v8 = vmul.f32 0.1, %v261_v59  ;;  %v192_v9 = vmul.f32 %v1017_v62, %v1306_v1  ;;  %1266 = vst [vmem:[%s1634_s3 + $0x90] sm:$0xff] %v1151_v3   ;;  %v262_v10 = vadd.f32 %v1320_v7, %v191_v63  ;;  %v1020_v11 = vunpack.c.l.bf16 %v1239_v0 }
  0x47   :  { %v1021_v12 = vunpack.c.h.bf16 %v1239_v0  ;;  %v1024_v13 = vunpack.c.l.bf16 %v1240_v2  ;;  %1267 = vst [vmem:[%s1634_s3 + $0x98] sm:$0xff] %v1156_v5   ;;  %v452_v14 = vsel %vm324_vm8, %v260_v58, %v388_v6  ;;  %v1025_v17 = vunpack.c.h.bf16 %v1240_v2 }
  0x48   :  { %v453_v15 = vsel %vm325_vm9, %v261_v59, %v389_v8  ;;  %v263_v16 = vadd.f32 %v1320_v7, %v192_v9  ;;  %vm326_vm10 = vcmp.ge.f32.partialorder %v262_v10, 0.0  ;;  %v390_v20 = vmul.f32 0.1, %v262_v10 }
  0x49   :  { %v1161_v19 = vpack.c.bf16 %v453_v15, %v452_v14  ;;  %v193_v21 = vmul.f32 %v1020_v11, %v1306_v1  ;;  %v194_v23 = vmul.f32 %v1021_v12, %v1306_v1  ;;  %v195_v24 = vmul.f32 %v1024_v13, %v1306_v1  ;;  %v1246_v14 = vld [vmem:[%s1631_s0 + $0xe8] sm:$0xff]  }
  0x4a   :  { %vm327_vm11 = vcmp.ge.f32.partialorder %v263_v16, 0.0  ;;  %v391_v22 = vmul.f32 0.1, %v263_v16  ;;  %v454_v25 = vsel %vm326_vm10, %v262_v10, %v390_v20  ;;  %v196_v27 = vmul.f32 %v1025_v17, %v1306_v1  ;;  %v1245_v10 = vld [vmem:[%s1631_s0 + $0xe0] sm:$0xff]  }
  0x4b   :  { %1268 = vst [vmem:[%s1634_s3 + $0xa0] sm:$0xff] %v1161_v19   ;;  %v264_v26 = vadd.f32 %v1320_v7, %v193_v21  ;;  %v1028_v28 = vunpack.c.l.bf16 %v1241_v18  ;;  %v265_v30 = vadd.f32 %v1320_v7, %v194_v23  ;;  %v266_v31 = vadd.f32 %v1320_v7, %v195_v24 }
  0x4c   :  { %v455_v29 = vsel %vm327_vm11, %v263_v16, %v391_v22  ;;  %v1029_v32 = vunpack.c.h.bf16 %v1241_v18  ;;  %v267_v35 = vadd.f32 %v1320_v7, %v196_v27  ;;  %v1032_v46 = vunpack.c.l.bf16 %v1242_v36 }
  0x4d   :  { %v1166_v33 = vpack.c.bf16 %v455_v29, %v454_v25  ;;  %vm328_vm12 = vcmp.ge.f32.partialorder %v264_v26, 0.0  ;;  %v392_v34 = vmul.f32 0.1, %v264_v26  ;;  %vm329_vm13 = vcmp.ge.f32.partialorder %v265_v30, 0.0 }
  0x4e   :  { %v393_v37 = vmul.f32 0.1, %v265_v30  ;;  %vm330_vm14 = vcmp.ge.f32.partialorder %v266_v31, 0.0  ;;  %v394_v38 = vmul.f32 0.1, %v266_v31  ;;  %vm331_vm15 = vcmp.ge.f32.partialorder %v267_v35, 0.0 }
  0x4f   :  { %1269 = vst [vmem:[%s1634_s3 + $0xa8] sm:$0xff] %v1166_v33   ;;  %v456_v39 = vsel %vm328_vm12, %v264_v26, %v392_v34  ;;  %v395_v40 = vmul.f32 0.1, %v267_v35  ;;  %v197_v41 = vmul.f32 %v1028_v28, %v1306_v1  ;;  %v198_v45 = vmul.f32 %v1029_v32, %v1306_v1 }
  0x50   :  { %v457_v43 = vsel %vm329_vm13, %v265_v30, %v393_v37  ;;  %v458_v44 = vsel %vm330_vm14, %v266_v31, %v394_v38  ;;  %v1033_v50 = vunpack.c.h.bf16 %v1242_v36  ;;  %v199_v53 = vmul.f32 %v1032_v46, %v1306_v1  ;;  %v1247_v30 = vld [vmem:[%s1631_s0 + $0xf0] sm:$0xff]  }
  0x51   :  { %v1171_v47 = vpack.c.bf16 %v457_v43, %v456_v39  ;;  %v459_v48 = vsel %vm331_vm15, %v267_v35, %v395_v40  ;;  %v268_v49 = vadd.f32 %v1320_v7, %v197_v41  ;;  %v269_v52 = vadd.f32 %v1320_v7, %v198_v45 }
  0x52   :  { %v1176_v51 = vpack.c.bf16 %v459_v48, %v458_v44  ;;  %v1036_v54 = vunpack.c.l.bf16 %v1243_v42  ;;  %v200_v57 = vmul.f32 %v1033_v50, %v1306_v1  ;;  %v1037_v58 = vunpack.c.h.bf16 %v1243_v42  ;;  %v1248_v44 = vld [vmem:[%s1631_s0 + $0xf8] sm:$0xff]  }
  0x53   :  { %1270 = vst [vmem:[%s1634_s3 + $0xb0] sm:$0xff] %v1171_v47   ;;  %vm332_vm0 = vcmp.ge.f32.partialorder %v268_v49, 0.0  ;;  %v396_v56 = vmul.f32 0.1, %v268_v49  ;;  %vm333_vm1 = vcmp.ge.f32.partialorder %v269_v52, 0.0  ;;  %v270_v60 = vadd.f32 %v1320_v7, %v199_v53 }
  0x54   :  { %1271 = vst [vmem:[%s1634_s3 + $0xb8] sm:$0xff] %v1176_v51   ;;  %v397_v59 = vmul.f32 0.1, %v269_v52  ;;  %v201_v61 = vmul.f32 %v1036_v54, %v1306_v1  ;;  %v271_v63 = vadd.f32 %v1320_v7, %v200_v57  ;;  %v202_v0 = vmul.f32 %v1037_v58, %v1306_v1 }
  0x55   :  { %v460_v62 = vsel %vm332_vm0, %v268_v49, %v396_v56  ;;  %v1040_v2 = vunpack.c.l.bf16 %v1244_v55  ;;  %vm334_vm2 = vcmp.ge.f32.partialorder %v270_v60, 0.0  ;;  %v398_v4 = vmul.f32 0.1, %v270_v60 }
  0x56   :  { %v461_v3 = vsel %vm333_vm1, %v269_v52, %v397_v59  ;;  %v272_v5 = vadd.f32 %v1320_v7, %v201_v61  ;;  %vm335_vm3 = vcmp.ge.f32.partialorder %v271_v63, 0.0  ;;  %v399_v8 = vmul.f32 0.1, %v271_v63 }
  0x57   :  { %v1181_v6 = vpack.c.bf16 %v461_v3, %v460_v62  ;;  %v273_v9 = vadd.f32 %v1320_v7, %v202_v0  ;;  %v462_v11 = vsel %vm334_vm2, %v270_v60, %v398_v4  ;;  %v1041_v13 = vunpack.c.h.bf16 %v1244_v55 }
  0x58   :  { %vm336_vm4 = vcmp.ge.f32.partialorder %v272_v5, 0.0  ;;  %v400_v12 = vmul.f32 0.1, %v272_v5  ;;  %v463_v15 = vsel %vm335_vm3, %v271_v63, %v399_v8  ;;  %v203_v17 = vmul.f32 %v1040_v2, %v1306_v1 }
  0x59   :  { %1272 = vst [vmem:[%s1634_s3 + $0xc0] sm:$0xff] %v1181_v6   ;;  %vm337_vm5 = vcmp.ge.f32.partialorder %v273_v9, 0.0  ;;  %v401_v16 = vmul.f32 0.1, %v273_v9  ;;  %v1186_v18 = vpack.c.bf16 %v463_v15, %v462_v11  ;;  %v204_v20 = vmul.f32 %v1041_v13, %v1306_v1 }
  0x5a   :  { %v464_v19 = vsel %vm336_vm4, %v272_v5, %v400_v12  ;;  %v1044_v21 = vunpack.c.l.bf16 %v1245_v10  ;;  %v274_v23 = vadd.f32 %v1320_v7, %v203_v17  ;;  %v1045_v24 = vunpack.c.h.bf16 %v1245_v10 }
  0x5b   :  { %v465_v22 = vsel %vm337_vm5, %v273_v9, %v401_v16  ;;  %v1048_v25 = vunpack.c.l.bf16 %v1246_v14  ;;  %1273 = vst [vmem:[%s1634_s3 + $0xc8] sm:$0xff] %v1186_v18   ;;  %v275_v27 = vadd.f32 %v1320_v7, %v204_v20  ;;  %v1049_v29 = vunpack.c.h.bf16 %v1246_v14 }
  0x5c   :  { %v1191_v26 = vpack.c.bf16 %v465_v22, %v464_v19  ;;  %v205_v28 = vmul.f32 %v1044_v21, %v1306_v1  ;;  %vm338_vm6 = vcmp.ge.f32.partialorder %v274_v23, 0.0  ;;  %v402_v31 = vmul.f32 0.1, %v274_v23 }
  0x5d   :  { %v206_v32 = vmul.f32 %v1045_v24, %v1306_v1  ;;  %v207_v33 = vmul.f32 %v1048_v25, %v1306_v1  ;;  %vm339_vm7 = vcmp.ge.f32.partialorder %v275_v27, 0.0  ;;  %v403_v34 = vmul.f32 0.1, %v275_v27 }
  0x5e   :  { %1274 = vst [vmem:[%s1634_s3 + $0xd0] sm:$0xff] %v1191_v26   ;;  %v276_v35 = vadd.f32 %v1320_v7, %v205_v28  ;;  %v208_v36 = vmul.f32 %v1049_v29, %v1306_v1  ;;  %v466_v37 = vsel %vm338_vm6, %v274_v23, %v402_v31  ;;  %v1052_v40 = vunpack.c.l.bf16 %v1247_v30 }
  0x5f   :  { %v277_v38 = vadd.f32 %v1320_v7, %v206_v32  ;;  %v278_v39 = vadd.f32 %v1320_v7, %v207_v33  ;;  %v467_v41 = vsel %vm339_vm7, %v275_v27, %v403_v34  ;;  %v1053_v51 = vunpack.c.h.bf16 %v1247_v30 }
  0x60   :  { %vm340_vm8 = vcmp.ge.f32.partialorder %v276_v35, 0.0  ;;  %v404_v42 = vmul.f32 0.1, %v276_v35  ;;  %v279_v43 = vadd.f32 %v1320_v7, %v208_v36  ;;  %v1196_v45 = vpack.c.bf16 %v467_v41, %v466_v37 }
  0x61   :  { %vm341_vm9 = vcmp.ge.f32.partialorder %v277_v38, 0.0  ;;  %v405_v46 = vmul.f32 0.1, %v277_v38  ;;  %vm342_vm10 = vcmp.ge.f32.partialorder %v278_v39, 0.0  ;;  %v406_v48 = vmul.f32 0.1, %v278_v39 }
  0x62   :  { %v468_v47 = vsel %vm340_vm8, %v276_v35, %v404_v42  ;;  %vm343_vm11 = vcmp.ge.f32.partialorder %v279_v43, 0.0  ;;  %v407_v49 = vmul.f32 0.1, %v279_v43  ;;  %1275 = vst [vmem:[%s1634_s3 + $0xd8] sm:$0xff] %v1196_v45   ;;  %v209_v52 = vmul.f32 %v1052_v40, %v1306_v1 }
  0x63   :  { %v469_v50 = vsel %vm341_vm9, %v277_v38, %v405_v46  ;;  %v1056_v53 = vunpack.c.l.bf16 %v1248_v44  ;;  %v470_v55 = vsel %vm342_vm10, %v278_v39, %v406_v48  ;;  %v1057_v57 = vunpack.c.h.bf16 %v1248_v44 }
  0x64   :  { %v1201_v54 = vpack.c.bf16 %v469_v50, %v468_v47  ;;  %v471_v56 = vsel %vm343_vm11, %v279_v43, %v407_v49  ;;  %v210_v59 = vmul.f32 %v1053_v51, %v1306_v1  ;;  %v280_v60 = vadd.f32 %v1320_v7, %v209_v52 }
  0x65   :  { %v1206_v58 = vpack.c.bf16 %v471_v56, %v470_v55  ;;  %v211_v61 = vmul.f32 %v1056_v53, %v1306_v1  ;;  %v212_v62 = vmul.f32 %v1057_v57, %v1306_v1 }
  0x66   :  { %1276 = vst [vmem:[%s1634_s3 + $0xe0] sm:$0xff] %v1201_v54   ;;  %v281_v63 = vadd.f32 %v1320_v7, %v210_v59  ;;  %vm344_vm12 = vcmp.ge.f32.partialorder %v280_v60, 0.0  ;;  %v408_v0 = vmul.f32 0.1, %v280_v60 }
  0x67   :  { %1277 = vst [vmem:[%s1634_s3 + $0xe8] sm:$0xff] %v1206_v58   ;;  %v282_v2 = vadd.f32 %v1320_v7, %v211_v61  ;;  %v283_v3 = vadd.f32 %v1320_v7, %v212_v62 }
  0x68   :  { %vm345_vm13 = vcmp.ge.f32.partialorder %v281_v63, 0.0  ;;  %v409_v4 = vmul.f32 0.1, %v281_v63  ;;  %v472_v5 = vsel %vm344_vm12, %v280_v60, %v408_v0 }
  0x69   :  { %vm346_vm14 = vcmp.ge.f32.partialorder %v282_v2, 0.0  ;;  %vm347_vm15 = vcmp.ge.f32.partialorder %v283_v3, 0.0  ;;  %v410_v6 = vmul.f32 0.1, %v282_v2  ;;  %v411_v8 = vmul.f32 0.1, %v283_v3 }
  0x6a   :  { %v473_v1 = vsel %vm345_vm13, %v281_v63, %v409_v4 }
  0x6b   :  { %v1211_v9 = vpack.c.bf16 %v473_v1, %v472_v5  ;;  %v474_v10 = vsel %vm346_vm14, %v282_v2, %v410_v6  ;;  %v475_v11 = vsel %vm347_vm15, %v283_v3, %v411_v8 }
  0x6c   :  { %v1216_v12 = vpack.c.bf16 %v475_v11, %v474_v10 }
  0x6d   :  { %1278 = vst [vmem:[%s1634_s3 + $0xf0] sm:$0xff] %v1211_v9  }
  0x6e   :  { %1279 = vst [vmem:[%s1634_s3 + $0xf8] sm:$0xff] %v1216_v12  }

// kernel: residual_forward.4
= control target key start
LH: loop header
LB: loop body
LE: loop exit
PB: predicated region body
PF: predicated region fallthrough
CT: control target
= control target key end

     0   :  { %vm1472_vm0 = vcmask 1040384   ;;  %s2449_s1 = inlined_call_operand.vmem [shape: bf16[128,128], index: 1, kind: input, shape index: {}]   ;;  %s2450_s0 = inlined_call_operand.vmem [shape: bf16[512,128], index: 0, kind: input, shape index: {}]   ;;  %s2451_s2 = inlined_call_operand.vmem [shape: bf16[512,128], index: 2, kind: output, shape index: {0}]   ;;  %s2452_s3 = inlined_call_operand.vmem [shape: f32[1,2,128], index: 3, kind: output, shape index: {1}]  }
   0x1   :  { %v1978_v0 = vld [vmem:[%s2449_s1 + $0x38] sm:$0xff]   ;;  %v1979_v1 = vld [vmem:[%s2449_s1 + $0x30] sm:$0xff]   ;;  %v1980_v2 = vld [vmem:[%s2449_s1 + $0x28] sm:$0xff]  }
   0x2   :  { %1882 = vmatprep.subr.bf16.mxu0 %v1978_v0  ;;  %1962 = vmatprep.subr.bf16.mxu1 %v1978_v0  ;;  %v1981_v3 = vld [vmem:[%s2449_s1 + $0x20] sm:$0xff]   ;;  %v1982_v5 = vld [vmem:[%s2449_s1 + $0x18] sm:$0xff]   ;;  %v1983_v6 = vld [vmem:[%s2449_s1 + $0x10] sm:$0xff]  }
   0x3   :  { %1883 = vmatpush3.bf16.msra.mxu0 %v1978_v0  ;;  %1970 = vmatpush3.bf16.msra.mxu1 %v1978_v0  ;;  %v1986_v4 = vld [vmem:[%s2450_s0] sm:$0xff]   ;;  %v1984_v7 = vld [vmem:[%s2449_s1 + $0x8] sm:$0xff]   ;;  %v1988_v11 = vld [vmem:[%s2450_s0 + $0x10] sm:$0xff]  }
   0x4   :  { %1884 = vmatprep.subr.bf16.mxu0 %v1979_v1  ;;  %1963 = vmatprep.subr.bf16.mxu1 %v1979_v1  ;;  %v1985_v8 = vld [vmem:[%s2449_s1] sm:$0xff]   ;;  %v1987_v10 = vld [vmem:[%s2450_s0 + $0x8] sm:$0xff]   ;;  %v2004_v13 = vld [vmem:[%s2450_s0 + $0x90] sm:$0xff]  }
   0x5   :  { %1898 = vmatprep.mubr.bf16.mxu0 %v1986_v4  ;;  %v2002_v9 = vld [vmem:[%s2450_s0 + $0x80] sm:$0xff]   ;;  %v2003_v12 = vld [vmem:[%s2450_s0 + $0x88] sm:$0xff]   ;;  %v1989_v14 = vld [vmem:[%s2450_s0 + $0x18] sm:$0xff]  }
   0x6   :  { %1930 = vmatprep.mubr.bf16.mxu1 %v2002_v9  ;;  %v1990_v15 = vld [vmem:[%s2450_s0 + $0x20] sm:$0xff]   ;;  %v2005_v16 = vld [vmem:[%s2450_s0 + $0x98] sm:$0xff]   ;;  %v1991_v18 = vld [vmem:[%s2450_s0 + $0x28] sm:$0xff]  }
   0x7   :  { %1885 = vmatpush3.bf16.msra.mxu0 %v1979_v1  ;;  %1971 = vmatpush3.bf16.msra.mxu1 %v1979_v1  ;;  %v2006_v17 = vld [vmem:[%s2450_s0 + $0xa0] sm:$0xff]   ;;  %v2007_v19 = vld [vmem:[%s2450_s0 + $0xa8] sm:$0xff]   ;;  %v1992_v20 = vld [vmem:[%s2450_s0 + $0x30] sm:$0xff]  }
   0x8   :  { %1886 = vmatprep.subr.bf16.mxu0 %v1980_v2  ;;  %1964 = vmatprep.subr.bf16.mxu1 %v1980_v2  ;;  %v2008_v21 = vld [vmem:[%s2450_s0 + $0xb0] sm:$0xff]   ;;  %v1993_v22 = vld [vmem:[%s2450_s0 + $0x38] sm:$0xff]   ;;  %v1994_v24 = vld [vmem:[%s2450_s0 + $0x40] sm:$0xff]  }
   0x9   :  { %v2009_v23 = vld [vmem:[%s2450_s0 + $0xb8] sm:$0xff]   ;;  %v2010_v25 = vld [vmem:[%s2450_s0 + $0xc0] sm:$0xff]   ;;  %v1995_v26 = vld [vmem:[%s2450_s0 + $0x48] sm:$0xff]  }
   0xa   :  { %v2011_v27 = vld [vmem:[%s2450_s0 + $0xc8] sm:$0xff]   ;;  %v1996_v28 = vld [vmem:[%s2450_s0 + $0x50] sm:$0xff]   ;;  %v1997_v30 = vld [vmem:[%s2450_s0 + $0x58] sm:$0xff]  }
   0xb   :  { %1887 = vmatpush3.bf16.msra.mxu0 %v1980_v2  ;;  %1972 = vmatpush3.bf16.msra.mxu1 %v1980_v2  ;;  %v2012_v29 = vld [vmem:[%s2450_s0 + $0xd0] sm:$0xff]   ;;  %v2013_v31 = vld [vmem:[%s2450_s0 + $0xd8] sm:$0xff]   ;;  %v1998_v32 = vld [vmem:[%s2450_s0 + $0x60] sm:$0xff]  }
   0xc   :  { %1888 = vmatprep.subr.bf16.mxu0 %v1981_v3  ;;  %1965 = vmatprep.subr.bf16.mxu1 %v1981_v3  ;;  %v2014_v33 = vld [vmem:[%s2450_s0 + $0xe0] sm:$0xff]   ;;  %v1999_v34 = vld [vmem:[%s2450_s0 + $0x68] sm:$0xff]   ;;  %v2000_v36 = vld [vmem:[%s2450_s0 + $0x70] sm:$0xff]  }
   0xd   :  { %v2015_v35 = vld [vmem:[%s2450_s0 + $0xe8] sm:$0xff]   ;;  %v2016_v37 = vld [vmem:[%s2450_s0 + $0xf0] sm:$0xff]   ;;  %v2001_v38 = vld [vmem:[%s2450_s0 + $0x78] sm:$0xff]  }
   0xe   :  { %v2017_v39 = vld [vmem:[%s2450_s0 + $0xf8] sm:$0xff]  }
   0xf   :  { %1889 = vmatpush3.bf16.msra.mxu0 %v1981_v3  ;;  %1973 = vmatpush3.bf16.msra.mxu1 %v1981_v3 }
  0x10   :  { %1890 = vmatprep.subr.bf16.mxu0 %v1982_v5  ;;  %1966 = vmatprep.subr.bf16.mxu1 %v1982_v5 }
  0x13   :  { %1891 = vmatpush3.bf16.msra.mxu0 %v1982_v5  ;;  %1974 = vmatpush3.bf16.msra.mxu1 %v1982_v5 }
  0x14   :  { %1892 = vmatprep.subr.bf16.mxu0 %v1983_v6  ;;  %1967 = vmatprep.subr.bf16.mxu1 %v1983_v6 }
  0x17   :  { %1893 = vmatpush3.bf16.msra.mxu0 %v1983_v6  ;;  %1975 = vmatpush3.bf16.msra.mxu1 %v1983_v6 }
  0x18   :  { %1894 = vmatprep.subr.bf16.mxu0 %v1984_v7  ;;  %1968 = vmatprep.subr.bf16.mxu1 %v1984_v7 }
  0x1b   :  { %1895 = vmatpush3.bf16.msra.mxu0 %v1984_v7  ;;  %1976 = vmatpush3.bf16.msra.mxu1 %v1984_v7 }
  0x1c   :  { %1896 = vmatprep.subr.bf16.mxu0 %v1985_v8  ;;  %1969 = vmatprep.subr.bf16.mxu1 %v1985_v8 }
  0x1f   :  { %1897 = vmatpush3.bf16.msra.mxu0 %v1985_v8  ;;  %1977 = vmatpush3.bf16.msra.mxu1 %v1985_v8 }
  0x22   :  { %1899 = vmatmul.mubr.bf16.vlgmr.msra.gmra.mxu0 %v1987_v10  ;;  %1931 = vmatmul.mubr.bf16.vlgmr.msra.gmra.mxu1 %v2003_v12 }
  0x23   :  { %1902 = vmatprep.mubr.bf16.mxu0 %v1988_v11  ;;  %1934 = vmatprep.mubr.bf16.mxu1 %v2004_v13 }
  0x2a   :  { %1903 = vmatmul.mubr.bf16.gmra.mxu0 %v1989_v14  ;;  %1935 = vmatmul.mubr.bf16.gmra.mxu1 %v2005_v16 }
  0x2b   :  { %1906 = vmatprep.mubr.bf16.mxu0 %v1990_v15  ;;  %1938 = vmatprep.mubr.bf16.mxu1 %v2006_v17 }
  0x32   :  { %1907 = vmatmul.mubr.bf16.gmra.mxu0 %v1991_v18  ;;  %1939 = vmatmul.mubr.bf16.gmra.mxu1 %v2007_v19 }
  0x33   :  { %1910 = vmatprep.mubr.bf16.mxu0 %v1992_v20  ;;  %1942 = vmatprep.mubr.bf16.mxu1 %v2008_v21 }
  0x3a   :  { %1911 = vmatmul.mubr.bf16.gmra.mxu0 %v1993_v22  ;;  %1943 = vmatmul.mubr.bf16.gmra.mxu1 %v2009_v23 }
  0x3b   :  { %1914 = vmatprep.mubr.bf16.mxu0 %v1994_v24  ;;  %1946 = vmatprep.mubr.bf16.mxu1 %v2010_v25 }
  0x42   :  { %1915 = vmatmul.mubr.bf16.gmra.mxu0 %v1995_v26  ;;  %1947 = vmatmul.mubr.bf16.gmra.mxu1 %v2011_v27 }
  0x43   :  { %1918 = vmatprep.mubr.bf16.mxu0 %v1996_v28  ;;  %1950 = vmatprep.mubr.bf16.mxu1 %v2012_v29 }
  0x4a   :  { %1919 = vmatmul.mubr.bf16.gmra.mxu0 %v1997_v30  ;;  %1951 = vmatmul.mubr.bf16.gmra.mxu1 %v2013_v31 }
  0x4b   :  { %1922 = vmatprep.mubr.bf16.mxu0 %v1998_v32  ;;  %1954 = vmatprep.mubr.bf16.mxu1 %v2014_v33 }
  0x52   :  { %1923 = vmatmul.mubr.bf16.gmra.mxu0 %v1999_v34  ;;  %1955 = vmatmul.mubr.bf16.gmra.mxu1 %v2015_v35 }
  0x53   :  { %1926 = vmatprep.mubr.bf16.mxu0 %v2000_v36  ;;  %1958 = vmatprep.mubr.bf16.mxu1 %v2016_v37 }
  0x5a   :  { %1927 = vmatmul.mubr.bf16.gmra.mxu0 %v2001_v38  ;;  %1959 = vmatmul.mubr.bf16.gmra.mxu1 %v2017_v39 }
  0xe2   :  { %v1900_v40 = vpop.f32.mrf.mxu0  ;;  %v2158_v41 = vpop.f32.mrf.mxu1 }
  0xe3   :  { %v1341_v57 = vmul.f32 %v1900_v40, %v1900_v40 }
  0xe4   :  { %v500_v42 = vpop.f32.mrf.mxu0  ;;  %v2160_v43 = vpop.f32.mrf.mxu1 }
  0xe5   :  { %v1339_v48 = vmul.f32 %v500_v42, %v500_v42 }
  0xe6   :  { %v1901_v44 = vpop.f32.mrf.mxu0  ;;  %v2162_v45 = vpop.f32.mrf.mxu1 }
  0xe7   :  { %v1659_v46 = vpack.c.bf16 %v1901_v44, %v1900_v40  ;;  %v1739_v47 = vpack.c.bf16 %v2162_v45, %v2158_v41  ;;  %v1342_v62 = vmul.f32 %v1901_v44, %v1901_v44 }
  0xe8   :  { %v503_v49 = vpop.f32.mrf.mxu0  ;;  %v2166_v50 = vpop.f32.mrf.mxu1 }
  0xe9   :  { %1811 = vst [vmem:[%s2451_s2 + $0x8] sm:$0xff] %v1659_v46   ;;  %v1654_v51 = vpack.c.bf16 %v503_v49, %v500_v42  ;;  %v1270_v52 = vadd.f32 %v503_v49, %v500_v42  ;;  %v1340_v53 = vmul.f32 %v503_v49, %v503_v49  ;;  %1827 = vst [vmem:[%s2451_s2 + $0x88] sm:$0xff] %v1739_v47  }
  0xea   :  { %v1734_v54 = vpack.c.bf16 %v2166_v50, %v2160_v43  ;;  %v1904_v55 = vpop.f32.mrf.mxu0  ;;  %v2176_v56 = vpop.f32.mrf.mxu1 }
  0xeb   :  { %1655 = vst [vmem:[%s2451_s2] sm:$0xff] %v1654_v51   ;;  %v1271_v58 = vadd.f32 %v1900_v40, %v1270_v52  ;;  %v1403_v59 = vadd.f32 %v1340_v53, %v1339_v48  ;;  %v1345_v17 = vmul.f32 %v1904_v55, %v1904_v55 }
  0xec   :  { %1826 = vst [vmem:[%s2451_s2 + $0x80] sm:$0xff] %v1734_v54   ;;  %v516_v60 = vpop.f32.mrf.mxu0  ;;  %v2184_v61 = vpop.f32.mrf.mxu1 }
  0xed   :  { %v1404_v63 = vadd.f32 %v1403_v59, %v1341_v57  ;;  %v1272_v0 = vadd.f32 %v1901_v44, %v1271_v58  ;;  %v1343_v4 = vmul.f32 %v516_v60, %v516_v60 }
  0xee   :  { %v1905_v1 = vpop.f32.mrf.mxu0  ;;  %v2186_v2 = vpop.f32.mrf.mxu1 }
  0xef   :  { %v1273_v3 = vadd.f32 %v1272_v0, %v516_v60  ;;  %v1405_v5 = vadd.f32 %v1404_v63, %v1342_v62  ;;  %v1669_v6 = vpack.c.bf16 %v1905_v1, %v1904_v55  ;;  %v1749_v8 = vpack.c.bf16 %v2186_v2, %v2176_v56 }
  0xf0   :  { %v519_v7 = vpop.f32.mrf.mxu0  ;;  %v2190_v9 = vpop.f32.mrf.mxu1  ;;  %v1346_v22 = vmul.f32 %v1905_v1, %v1905_v1 }
  0xf1   :  { %v1406_v10 = vadd.f32 %v1405_v5, %v1343_v4  ;;  %1813 = vst [vmem:[%s2451_s2 + $0x18] sm:$0xff] %v1669_v6   ;;  %v1664_v11 = vpack.c.bf16 %v519_v7, %v516_v60  ;;  %v1274_v12 = vadd.f32 %v1273_v3, %v519_v7  ;;  %v1344_v13 = vmul.f32 %v519_v7, %v519_v7 }
  0xf2   :  { %v1908_v14 = vpop.f32.mrf.mxu0  ;;  %1829 = vst [vmem:[%s2451_s2 + $0x98] sm:$0xff] %v1749_v8   ;;  %v1744_v15 = vpack.c.bf16 %v2190_v9, %v2184_v61  ;;  %v2200_v16 = vpop.f32.mrf.mxu1 }
  0xf3   :  { %1812 = vst [vmem:[%s2451_s2 + $0x10] sm:$0xff] %v1664_v11   ;;  %v1275_v18 = vadd.f32 %v1904_v55, %v1274_v12  ;;  %v1407_v19 = vadd.f32 %v1406_v10, %v1344_v13  ;;  %v1349_v42 = vmul.f32 %v1908_v14, %v1908_v14 }
  0xf4   :  { %v532_v20 = vpop.f32.mrf.mxu0  ;;  %1828 = vst [vmem:[%s2451_s2 + $0x90] sm:$0xff] %v1744_v15   ;;  %v2208_v21 = vpop.f32.mrf.mxu1 }
  0xf5   :  { %v1408_v23 = vadd.f32 %v1407_v19, %v1345_v17  ;;  %v1276_v24 = vadd.f32 %v1905_v1, %v1275_v18  ;;  %v1347_v28 = vmul.f32 %v532_v20, %v532_v20 }
  0xf6   :  { %v1909_v25 = vpop.f32.mrf.mxu0  ;;  %v2210_v26 = vpop.f32.mrf.mxu1 }
  0xf7   :  { %v1277_v27 = vadd.f32 %v1276_v24, %v532_v20  ;;  %v1409_v29 = vadd.f32 %v1408_v23, %v1346_v22  ;;  %v1679_v30 = vpack.c.bf16 %v1909_v25, %v1908_v14  ;;  %v1759_v32 = vpack.c.bf16 %v2210_v26, %v2200_v16 }
  0xf8   :  { %v535_v31 = vpop.f32.mrf.mxu0  ;;  %v2214_v33 = vpop.f32.mrf.mxu1  ;;  %v1350_v49 = vmul.f32 %v1909_v25, %v1909_v25 }
  0xf9   :  { %v1410_v34 = vadd.f32 %v1409_v29, %v1347_v28  ;;  %1815 = vst [vmem:[%s2451_s2 + $0x28] sm:$0xff] %v1679_v30   ;;  %v1674_v35 = vpack.c.bf16 %v535_v31, %v532_v20  ;;  %v1278_v36 = vadd.f32 %v1277_v27, %v535_v31  ;;  %v1348_v37 = vmul.f32 %v535_v31, %v535_v31 }
  0xfa   :  { %v1912_v38 = vpop.f32.mrf.mxu0  ;;  %1831 = vst [vmem:[%s2451_s2 + $0xa8] sm:$0xff] %v1759_v32   ;;  %v1754_v39 = vpack.c.bf16 %v2214_v33, %v2208_v21  ;;  %v2224_v40 = vpop.f32.mrf.mxu1 }
  0xfb   :  { %1814 = vst [vmem:[%s2451_s2 + $0x20] sm:$0xff] %v1674_v35   ;;  %v1279_v44 = vadd.f32 %v1908_v14, %v1278_v36  ;;  %v1411_v46 = vadd.f32 %v1410_v34, %v1348_v37  ;;  %v1353_v8 = vmul.f32 %v1912_v38, %v1912_v38 }
  0xfc   :  { %v548_v47 = vpop.f32.mrf.mxu0  ;;  %1830 = vst [vmem:[%s2451_s2 + $0xa0] sm:$0xff] %v1754_v39   ;;  %v2232_v48 = vpop.f32.mrf.mxu1 }
  0xfd   :  { %v1412_v51 = vadd.f32 %v1411_v46, %v1349_v42  ;;  %v1280_v52 = vadd.f32 %v1909_v25, %v1279_v44  ;;  %v1351_v57 = vmul.f32 %v548_v47, %v548_v47 }
  0xfe   :  { %v1913_v53 = vpop.f32.mrf.mxu0  ;;  %v2234_v54 = vpop.f32.mrf.mxu1 }
  0xff   :  { %v1281_v55 = vadd.f32 %v1280_v52, %v548_v47  ;;  %v1413_v58 = vadd.f32 %v1412_v51, %v1350_v49  ;;  %v1689_v59 = vpack.c.bf16 %v1913_v53, %v1912_v38  ;;  %v1769_v62 = vpack.c.bf16 %v2234_v54, %v2224_v40 }
 0x100   :  { %v551_v60 = vpop.f32.mrf.mxu0  ;;  %v2238_v63 = vpop.f32.mrf.mxu1  ;;  %v1354_v14 = vmul.f32 %v1913_v53, %v1913_v53 }
 0x101   :  { %v1414_v0 = vadd.f32 %v1413_v58, %v1351_v57  ;;  %1817 = vst [vmem:[%s2451_s2 + $0x38] sm:$0xff] %v1689_v59   ;;  %v1684_v1 = vpack.c.bf16 %v551_v60, %v548_v47  ;;  %v1282_v3 = vadd.f32 %v1281_v55, %v551_v60  ;;  %v1352_v4 = vmul.f32 %v551_v60, %v551_v60 }
 0x102   :  { %v1916_v5 = vpop.f32.mrf.mxu0  ;;  %1833 = vst [vmem:[%s2451_s2 + $0xb8] sm:$0xff] %v1769_v62   ;;  %v1764_v6 = vpack.c.bf16 %v2238_v63, %v2232_v48  ;;  %v2248_v7 = vpop.f32.mrf.mxu1 }
 0x103   :  { %1816 = vst [vmem:[%s2451_s2 + $0x30] sm:$0xff] %v1684_v1   ;;  %v1283_v10 = vadd.f32 %v1912_v38, %v1282_v3  ;;  %v1415_v11 = vadd.f32 %v1414_v0, %v1352_v4  ;;  %v1357_v37 = vmul.f32 %v1916_v5, %v1916_v5 }
 0x104   :  { %v564_v12 = vpop.f32.mrf.mxu0  ;;  %1832 = vst [vmem:[%s2451_s2 + $0xb0] sm:$0xff] %v1764_v6   ;;  %v2256_v13 = vpop.f32.mrf.mxu1 }
 0x105   :  { %v1416_v15 = vadd.f32 %v1415_v11, %v1353_v8  ;;  %v1284_v17 = vadd.f32 %v1913_v53, %v1283_v10  ;;  %v1355_v22 = vmul.f32 %v564_v12, %v564_v12 }
 0x106   :  { %v1917_v18 = vpop.f32.mrf.mxu0  ;;  %v2258_v19 = vpop.f32.mrf.mxu1 }
 0x107   :  { %v1285_v20 = vadd.f32 %v1284_v17, %v564_v12  ;;  %v1417_v23 = vadd.f32 %v1416_v15, %v1354_v14  ;;  %v1699_v24 = vpack.c.bf16 %v1917_v18, %v1916_v5  ;;  %v1779_v27 = vpack.c.bf16 %v2258_v19, %v2248_v7 }
 0x108   :  { %v567_v25 = vpop.f32.mrf.mxu0  ;;  %v2262_v28 = vpop.f32.mrf.mxu1  ;;  %v1358_v46 = vmul.f32 %v1917_v18, %v1917_v18 }
 0x109   :  { %v1418_v29 = vadd.f32 %v1417_v23, %v1355_v22  ;;  %1819 = vst [vmem:[%s2451_s2 + $0x48] sm:$0xff] %v1699_v24   ;;  %v1694_v30 = vpack.c.bf16 %v567_v25, %v564_v12  ;;  %v1286_v31 = vadd.f32 %v1285_v20, %v567_v25  ;;  %v1356_v32 = vmul.f32 %v567_v25, %v567_v25 }
 0x10a   :  { %v1920_v34 = vpop.f32.mrf.mxu0  ;;  %1835 = vst [vmem:[%s2451_s2 + $0xc8] sm:$0xff] %v1779_v27   ;;  %v1774_v35 = vpack.c.bf16 %v2262_v28, %v2256_v13  ;;  %v2272_v36 = vpop.f32.mrf.mxu1 }
 0x10b   :  { %1818 = vst [vmem:[%s2451_s2 + $0x40] sm:$0xff] %v1694_v30   ;;  %v1287_v38 = vadd.f32 %v1916_v5, %v1286_v31  ;;  %v1419_v39 = vadd.f32 %v1418_v29, %v1356_v32  ;;  %v1361_v10 = vmul.f32 %v1920_v34, %v1920_v34 }
 0x10c   :  { %v580_v42 = vpop.f32.mrf.mxu0  ;;  %1834 = vst [vmem:[%s2451_s2 + $0xc0] sm:$0xff] %v1774_v35   ;;  %v2280_v44 = vpop.f32.mrf.mxu1 }
 0x10d   :  { %v1420_v47 = vadd.f32 %v1419_v39, %v1357_v37  ;;  %v1288_v49 = vadd.f32 %v1917_v18, %v1287_v38  ;;  %v1359_v55 = vmul.f32 %v580_v42, %v580_v42 }
 0x10e   :  { %v1921_v51 = vpop.f32.mrf.mxu0  ;;  %v2282_v52 = vpop.f32.mrf.mxu1 }
 0x10f   :  { %v1289_v53 = vadd.f32 %v1288_v49, %v580_v42  ;;  %v1421_v57 = vadd.f32 %v1420_v47, %v1358_v46  ;;  %v1709_v58 = vpack.c.bf16 %v1921_v51, %v1920_v34  ;;  %v1789_v60 = vpack.c.bf16 %v2282_v52, %v2272_v36 }
 0x110   :  { %v583_v59 = vpop.f32.mrf.mxu0  ;;  %v2286_v62 = vpop.f32.mrf.mxu1  ;;  %v1362_v17 = vmul.f32 %v1921_v51, %v1921_v51 }
 0x111   :  { %v1422_v0 = vadd.f32 %v1421_v57, %v1359_v55  ;;  %1821 = vst [vmem:[%s2451_s2 + $0x58] sm:$0xff] %v1709_v58   ;;  %v1704_v1 = vpack.c.bf16 %v583_v59, %v580_v42  ;;  %v1290_v3 = vadd.f32 %v1289_v53, %v583_v59  ;;  %v1360_v4 = vmul.f32 %v583_v59, %v583_v59 }
 0x112   :  { %v1924_v5 = vpop.f32.mrf.mxu0  ;;  %1837 = vst [vmem:[%s2451_s2 + $0xd8] sm:$0xff] %v1789_v60   ;;  %v1784_v6 = vpack.c.bf16 %v2286_v62, %v2280_v44  ;;  %v2296_v8 = vpop.f32.mrf.mxu1 }
 0x113   :  { %1820 = vst [vmem:[%s2451_s2 + $0x50] sm:$0xff] %v1704_v1   ;;  %v1291_v11 = vadd.f32 %v1920_v34, %v1290_v3  ;;  %v1423_v12 = vadd.f32 %v1422_v0, %v1360_v4  ;;  %v1365_v47 = vmul.f32 %v1924_v5, %v1924_v5 }
 0x114   :  { %v596_v14 = vpop.f32.mrf.mxu0  ;;  %1836 = vst [vmem:[%s2451_s2 + $0xd0] sm:$0xff] %v1784_v6   ;;  %v2304_v15 = vpop.f32.mrf.mxu1 }
 0x115   :  { %v1424_v18 = vadd.f32 %v1423_v12, %v1361_v10  ;;  %v1292_v20 = vadd.f32 %v1921_v51, %v1291_v11  ;;  %v1363_v25 = vmul.f32 %v596_v14, %v596_v14 }
 0x116   :  { %v1925_v22 = vpop.f32.mrf.mxu0  ;;  %v2306_v23 = vpop.f32.mrf.mxu1 }
 0x117   :  { %v1293_v24 = vadd.f32 %v1292_v20, %v596_v14  ;;  %v1425_v27 = vadd.f32 %v1424_v18, %v1362_v17  ;;  %v1719_v29 = vpack.c.bf16 %v1925_v22, %v1924_v5  ;;  %v1799_v31 = vpack.c.bf16 %v2306_v23, %v2296_v8 }
 0x118   :  { %v599_v30 = vpop.f32.mrf.mxu0  ;;  %v2310_v32 = vpop.f32.mrf.mxu1  ;;  %v1366_v57 = vmul.f32 %v1925_v22, %v1925_v22 }
 0x119   :  { %v1426_v34 = vadd.f32 %v1425_v27, %v1363_v25  ;;  %1823 = vst [vmem:[%s2451_s2 + $0x68] sm:$0xff] %v1719_v29   ;;  %v1714_v35 = vpack.c.bf16 %v599_v30, %v596_v14  ;;  %v1294_v37 = vadd.f32 %v1293_v24, %v599_v30  ;;  %v1364_v38 = vmul.f32 %v599_v30, %v599_v30 }
 0x11a   :  { %v1928_v39 = vpop.f32.mrf.mxu0  ;;  %1839 = vst [vmem:[%s2451_s2 + $0xe8] sm:$0xff] %v1799_v31   ;;  %v1794_v42 = vpack.c.bf16 %v2310_v32, %v2304_v15  ;;  %v2320_v46 = vpop.f32.mrf.mxu1  ;;  %v1371_v31 = vmul.f32 %v2160_v43, %v2160_v43 }
 0x11b   :  { %1822 = vst [vmem:[%s2451_s2 + $0x60] sm:$0xff] %v1714_v35   ;;  %v1295_v49 = vadd.f32 %v1924_v5, %v1294_v37  ;;  %v1427_v51 = vadd.f32 %v1426_v34, %v1364_v38  ;;  %v1372_v38 = vmul.f32 %v2166_v50, %v2166_v50 }
 0x11c   :  { %v612_v53 = vpop.f32.mrf.mxu0  ;;  %1838 = vst [vmem:[%s2451_s2 + $0xe0] sm:$0xff] %v1794_v42   ;;  %v2328_v55 = vpop.f32.mrf.mxu1  ;;  %v1373_v42 = vmul.f32 %v2158_v41, %v2158_v41 }
 0x11d   :  { %v1428_v58 = vadd.f32 %v1427_v51, %v1365_v47  ;;  %v1296_v59 = vadd.f32 %v1925_v22, %v1295_v49  ;;  %v1367_v3 = vmul.f32 %v612_v53, %v612_v53  ;;  %v1369_v22 = vmul.f32 %v1928_v39, %v1928_v39 }
 0x11e   :  { %v1929_v60 = vpop.f32.mrf.mxu0  ;;  %v2330_v0 = vpop.f32.mrf.mxu1  ;;  %v1374_v51 = vmul.f32 %v2162_v45, %v2162_v45 }
 0x11f   :  { %v1297_v1 = vadd.f32 %v1296_v59, %v612_v53  ;;  %v1429_v4 = vadd.f32 %v1428_v58, %v1366_v57  ;;  %v1729_v6 = vpack.c.bf16 %v1929_v60, %v1928_v39  ;;  %v1809_v5 = vpack.c.bf16 %v2330_v0, %v2320_v46 }
 0x120   :  { %v615_v10 = vpop.f32.mrf.mxu0  ;;  %v2334_v11 = vpop.f32.mrf.mxu1  ;;  %v1370_v27 = vmul.f32 %v1929_v60, %v1929_v60  ;;  %v1375_v58 = vmul.f32 %v2184_v61, %v2184_v61 }
 0x121   :  { %v1430_v12 = vadd.f32 %v1429_v4, %v1367_v3  ;;  %1825 = vst [vmem:[%s2451_s2 + $0x78] sm:$0xff] %v1729_v6   ;;  %v1724_v14 = vpack.c.bf16 %v615_v10, %v612_v53  ;;  %v1298_v17 = vadd.f32 %v1297_v1, %v615_v10  ;;  %v1368_v18 = vmul.f32 %v615_v10, %v615_v10 }
 0x122   :  { %1841 = vst [vmem:[%s2451_s2 + $0xf8] sm:$0xff] %v1809_v5   ;;  %v1804_v20 = vpack.c.bf16 %v2334_v11, %v2328_v55  ;;  %v1376_v1 = vmul.f32 %v2190_v9, %v2190_v9  ;;  %v1379_v5 = vmul.f32 %v2208_v21, %v2208_v21 }
 0x123   :  { %1824 = vst [vmem:[%s2451_s2 + $0x70] sm:$0xff] %v1724_v14   ;;  %v1299_v24 = vadd.f32 %v1928_v39, %v1298_v17  ;;  %v1431_v25 = vadd.f32 %v1430_v12, %v1368_v18  ;;  %v1380_v17 = vmul.f32 %v2214_v33, %v2214_v33 }
 0x124   :  { %1840 = vst [vmem:[%s2451_s2 + $0xf0] sm:$0xff] %v1804_v20  }
 0x125   :  { %v1300_v29 = vadd.f32 %v1929_v60, %v1299_v24  ;;  %v1432_v30 = vadd.f32 %v1431_v25, %v1369_v22  ;;  %v1383_v25 = vmul.f32 %v2232_v48, %v2232_v48 }
 0x127   :  { %v1433_v34 = vadd.f32 %v1432_v30, %v1370_v27  ;;  %v1301_v35 = vadd.f32 %v1300_v29, %v2160_v43  ;;  %v1384_v30 = vmul.f32 %v2238_v63, %v2238_v63 }
 0x129   :  { %v1302_v37 = vadd.f32 %v1301_v35, %v2166_v50  ;;  %v1434_v39 = vadd.f32 %v1433_v34, %v1371_v31 }
 0x12b   :  { %v1303_v47 = vadd.f32 %v2158_v41, %v1302_v37  ;;  %v1435_v49 = vadd.f32 %v1434_v39, %v1372_v38  ;;  %v1377_v41 = vmul.f32 %v2176_v56, %v2176_v56  ;;  %v1387_v38 = vmul.f32 %v2256_v13, %v2256_v13 }
 0x12d   :  { %v1436_v53 = vadd.f32 %v1435_v49, %v1373_v42  ;;  %v1304_v57 = vadd.f32 %v2162_v45, %v1303_v47  ;;  %v1378_v45 = vmul.f32 %v2186_v2, %v2186_v2  ;;  %v1388_v47 = vmul.f32 %v2262_v28, %v2262_v28 }
 0x12f   :  { %v1305_v43 = vadd.f32 %v1304_v57, %v2184_v61  ;;  %v1437_v59 = vadd.f32 %v1436_v53, %v1374_v51 }
 0x131   :  { %v1438_v50 = vadd.f32 %v1437_v59, %v1375_v58  ;;  %v1306_v60 = vadd.f32 %v1305_v43, %v2190_v9  ;;  %v1391_v43 = vmul.f32 %v2280_v44, %v2280_v44 }
 0x133   :  { %v1307_v3 = vadd.f32 %v2176_v56, %v1306_v60  ;;  %v1439_v4 = vadd.f32 %v1438_v50, %v1376_v1  ;;  %v1381_v56 = vmul.f32 %v2200_v16, %v2200_v16  ;;  %v1392_v50 = vmul.f32 %v2286_v62, %v2286_v62 }
 0x135   :  { %v1440_v6 = vadd.f32 %v1439_v4, %v1377_v41  ;;  %v1308_v10 = vadd.f32 %v2186_v2, %v1307_v3  ;;  %v1382_v2 = vmul.f32 %v2210_v26, %v2210_v26  ;;  %v1395_v4 = vmul.f32 %v2304_v15, %v2304_v15 }
 0x137   :  { %v1309_v61 = vadd.f32 %v1308_v10, %v2208_v21  ;;  %v1441_v12 = vadd.f32 %v1440_v6, %v1378_v45  ;;  %v1396_v10 = vmul.f32 %v2310_v32, %v2310_v32 }
 0x139   :  { %v1442_v14 = vadd.f32 %v1441_v12, %v1379_v5  ;;  %v1310_v9 = vadd.f32 %v1309_v61, %v2214_v33 }
 0x13b   :  { %v1311_v18 = vadd.f32 %v2200_v16, %v1310_v9  ;;  %v1443_v20 = vadd.f32 %v1442_v14, %v1380_v17  ;;  %v1385_v16 = vmul.f32 %v2224_v40, %v2224_v40  ;;  %v1399_v9 = vmul.f32 %v2328_v55, %v2328_v55 }
 0x13d   :  { %v1444_v22 = vadd.f32 %v1443_v20, %v1381_v56  ;;  %v1312_v24 = vadd.f32 %v2210_v26, %v1311_v18  ;;  %v1386_v26 = vmul.f32 %v2234_v54, %v2234_v54  ;;  %v1400_v18 = vmul.f32 %v2334_v11, %v2334_v11 }
 0x13f   :  { %v1313_v21 = vadd.f32 %v1312_v24, %v2232_v48  ;;  %v1445_v27 = vadd.f32 %v1444_v22, %v1382_v2 }
 0x141   :  { %v1446_v29 = vadd.f32 %v1445_v27, %v1383_v25  ;;  %v1314_v33 = vadd.f32 %v1313_v21, %v2238_v63 }
 0x143   :  { %v1315_v31 = vadd.f32 %v2224_v40, %v1314_v33  ;;  %v1447_v34 = vadd.f32 %v1446_v29, %v1384_v30  ;;  %v1389_v40 = vmul.f32 %v2248_v7, %v2248_v7 }
 0x145   :  { %v1448_v35 = vadd.f32 %v1447_v34, %v1385_v16  ;;  %v1316_v37 = vadd.f32 %v2234_v54, %v1315_v31  ;;  %v1390_v54 = vmul.f32 %v2258_v19, %v2258_v19 }
 0x147   :  { %v1317_v48 = vadd.f32 %v1316_v37, %v2256_v13  ;;  %v1449_v39 = vadd.f32 %v1448_v35, %v1386_v26 }
 0x149   :  { %v1450_v42 = vadd.f32 %v1449_v39, %v1387_v38  ;;  %v1318_v63 = vadd.f32 %v1317_v48, %v2262_v28 }
 0x14b   :  { %v1319_v49 = vadd.f32 %v2248_v7, %v1318_v63  ;;  %v1451_v51 = vadd.f32 %v1450_v42, %v1388_v47  ;;  %v1393_v7 = vmul.f32 %v2272_v36, %v2272_v36 }
 0x14d   :  { %v1452_v53 = vadd.f32 %v1451_v51, %v1389_v40  ;;  %v1320_v57 = vadd.f32 %v2258_v19, %v1319_v49  ;;  %v1394_v19 = vmul.f32 %v2282_v52, %v2282_v52 }
 0x14f   :  { %v1321_v13 = vadd.f32 %v1320_v57, %v2280_v44  ;;  %v1453_v58 = vadd.f32 %v1452_v53, %v1390_v54 }
 0x151   :  { %v1454_v59 = vadd.f32 %v1453_v58, %v1391_v43  ;;  %v1322_v28 = vadd.f32 %v1321_v13, %v2286_v62 }
 0x153   :  { %v1323_v60 = vadd.f32 %v2272_v36, %v1322_v28  ;;  %v1455_v1 = vadd.f32 %v1454_v59, %v1392_v50  ;;  %v1397_v36 = vmul.f32 %v2296_v8, %v2296_v8 }
 0x155   :  { %v1456_v41 = vadd.f32 %v1455_v1, %v1393_v7  ;;  %v1324_v3 = vadd.f32 %v2282_v52, %v1323_v60  ;;  %v1398_v52 = vmul.f32 %v2306_v23, %v2306_v23 }
 0x157   :  { %v1325_v44 = vadd.f32 %v1324_v3, %v2304_v15  ;;  %v1457_v45 = vadd.f32 %v1456_v41, %v1394_v19 }
 0x159   :  { %v1458_v6 = vadd.f32 %v1457_v45, %v1395_v4  ;;  %v1326_v62 = vadd.f32 %v1325_v44, %v2310_v32 }
 0x15b   :  { %v1327_v61 = vadd.f32 %v2296_v8, %v1326_v62  ;;  %v1459_v5 = vadd.f32 %v1458_v6, %v1396_v10  ;;  %v1401_v8 = vmul.f32 %v2320_v46, %v2320_v46 }
 0x15d   :  { %v1460_v12 = vadd.f32 %v1459_v5, %v1397_v36  ;;  %v1328_v14 = vadd.f32 %v2306_v23, %v1327_v61  ;;  %v1402_v23 = vmul.f32 %v2330_v0, %v2330_v0 }
 0x15f   :  { %v1329_v15 = vadd.f32 %v1328_v14, %v2328_v55  ;;  %v1461_v17 = vadd.f32 %v1460_v12, %v1398_v52 }
 0x161   :  { %v1462_v56 = vadd.f32 %v1461_v17, %v1399_v9  ;;  %v1330_v32 = vadd.f32 %v1329_v15, %v2334_v11 }
 0x163   :  { %v1331_v20 = vadd.f32 %v2320_v46, %v1330_v32  ;;  %v1463_v2 = vadd.f32 %v1462_v56, %v1400_v18 }
 0x165   :  { %v1332_v22 = vadd.f32 %v2330_v0, %v1331_v20  ;;  %v1464_v24 = vadd.f32 %v1463_v2, %v1401_v8 }
 0x167   :  { %v1333_v55 = vrot.slane %v1332_v22, 4  ;;  %v1465_v21 = vadd.f32 %v1464_v24, %v1402_v23 }
 0x169   :  { %v1334_v25 = vadd.f32 %v1333_v55, %v1332_v22  ;;  %v1466_v27 = vrot.slane %v1465_v21, 4 }
 0x16b   :  { %v1335_v29 = vrot.slane %v1334_v25, 2  ;;  %v1467_v33 = vadd.f32 %v1466_v27, %v1465_v21 }
 0x16d   :  { %v1336_v30 = vadd.f32 %v1335_v29, %v1334_v25  ;;  %v1468_v11 = vrot.slane %v1467_v33, 2 }
 0x16f   :  { %v1337_v16 = vrot.slane %v1336_v30, 1  ;;  %v1469_v31 = vadd.f32 %v1468_v11, %v1467_v33 }
 0x171   :  { %v1470_v34 = vrot.slane %v1469_v31, 1  ;;  %v1338_v46 = vadd.f32 %v1337_v16, %v1336_v30 }
 0x173   :  { %v1471_v26 = vadd.f32 %v1470_v34, %v1469_v31 }
 0x175   :  { %v1473_v35 = vsel %vm1472_vm0, %v1338_v46, %v1471_v26 }
 0x176   :  { %1474 = vst [vmem:[%s2452_s3] sm:$0x3] %v1473_v35 }

// kernel: residual_forward.7
= control target key start
LH: loop header
LB: loop body
LE: loop exit
PB: predicated region body
PF: predicated region fallthrough
CT: control target
= control target key end

     0   :  { %s1151_s0 = inlined_call_operand.vmem [shape: bf16[512,128], index: 0, kind: input, shape index: {}]   ;;  %s1152_s1 = inlined_call_operand.vmem [shape: f32[1,128], index: 1, kind: input, shape index: {}]   ;;  %s1153_s2 = inlined_call_operand.vmem [shape: f32[1,128], index: 2, kind: input, shape index: {}]   ;;  %s1154_s3 = inlined_call_operand.vmem [shape: f32[512,128], index: 3, kind: output, shape index: {}]  }
   0x1   :  { %v547_v0 = vld [vmem:[%s1151_s0] sm:$0xff]   ;;  %v674_v4 = vld [vmem:[%s1151_s0 + $0x8] sm:$0xff]   ;;  %v675_v5 = vld [vmem:[%s1151_s0 + $0x10] sm:$0xff]  }
   0x2   :  { %v731_v1 = vld [vmem:[%s1152_s1] ss:$0 sm:$0xff]  ;;  %v548_v2 = vunpack.c.l.bf16 %v547_v0  ;;  %v549_v3 = vunpack.c.h.bf16 %v547_v0  ;;  %v676_v6 = vld [vmem:[%s1151_s0 + $0x18] sm:$0xff]   ;;  %v552_v8 = vunpack.c.l.bf16 %v674_v4  ;;  %v553_v9 = vunpack.c.h.bf16 %v674_v4  ;;  %v678_v36 = vld [vmem:[%s1151_s0 + $0x28] sm:$0xff]  }
   0x3   :  { %v745_v7 = vld [vmem:[%s1153_s2] ss:$0 sm:$0xff]  ;;  %v556_v10 = vunpack.c.l.bf16 %v675_v5  ;;  %v557_v11 = vunpack.c.h.bf16 %v675_v5  ;;  %v560_v14 = vunpack.c.l.bf16 %v676_v6  ;;  %v561_v15 = vunpack.c.h.bf16 %v676_v6  ;;  %v679_v48 = vld [vmem:[%s1151_s0 + $0x30] sm:$0xff]   ;;  %v680_v55 = vld [vmem:[%s1151_s0 + $0x38] sm:$0xff]  }
   0x4   :  { %v149_v12 = vmul.f32 %v548_v2, %v731_v1  ;;  %v150_v13 = vmul.f32 %v549_v3, %v731_v1  ;;  %v151_v16 = vmul.f32 %v552_v8, %v731_v1  ;;  %v152_v17 = vmul.f32 %v553_v9, %v731_v1  ;;  %v677_v28 = vld [vmem:[%s1151_s0 + $0x20] sm:$0xff]  }
   0x5   :  { %v153_v18 = vmul.f32 %v556_v10, %v731_v1  ;;  %v154_v19 = vmul.f32 %v557_v11, %v731_v1  ;;  %v155_v22 = vmul.f32 %v560_v14, %v731_v1  ;;  %v156_v23 = vmul.f32 %v561_v15, %v731_v1  ;;  %v681_v14 = vld [vmem:[%s1151_s0 + $0x40] sm:$0xff]  }
   0x6   :  { %v220_v20 = vadd.f32 %v745_v7, %v149_v12  ;;  %v221_v21 = vadd.f32 %v745_v7, %v150_v13  ;;  %v222_v24 = vadd.f32 %v745_v7, %v151_v16  ;;  %v223_v25 = vadd.f32 %v745_v7, %v152_v17 }
   0x7   :  { %v224_v26 = vadd.f32 %v745_v7, %v153_v18  ;;  %v225_v27 = vadd.f32 %v745_v7, %v154_v19  ;;  %v226_v41 = vadd.f32 %v745_v7, %v155_v22  ;;  %v227_v42 = vadd.f32 %v745_v7, %v156_v23  ;;  %v682_v19 = vld [vmem:[%s1151_s0 + $0x48] sm:$0xff]  }
   0x8   :  { %vm284_vm0 = vcmp.ge.f32.partialorder %v220_v20, 0.0  ;;  %v348_v29 = vmul.f32 0.1, %v220_v20  ;;  %vm285_vm1 = vcmp.ge.f32.partialorder %v221_v21, 0.0  ;;  %v349_v30 = vmul.f32 0.1, %v221_v21 }
   0x9   :  { %vm286_vm2 = vcmp.ge.f32.partialorder %v222_v24, 0.0  ;;  %v350_v31 = vmul.f32 0.1, %v222_v24  ;;  %vm287_vm3 = vcmp.ge.f32.partialorder %v223_v25, 0.0  ;;  %v351_v32 = vmul.f32 0.1, %v223_v25 }
   0xa   :  { %v412_v33 = vsel %vm284_vm0, %v220_v20, %v348_v29  ;;  %v413_v34 = vsel %vm285_vm1, %v221_v21, %v349_v30  ;;  %vm288_vm4 = vcmp.ge.f32.partialorder %v224_v26, 0.0  ;;  %v352_v35 = vmul.f32 0.1, %v224_v26  ;;  %v683_v30 = vld [vmem:[%s1151_s0 + $0x50] sm:$0xff]  }
   0xb   :  { %476 = vst [vmem:[%s1154_s3] sm:$0xff] %v412_v33  ;;  %477 = vst [vmem:[%s1154_s3 + $0x8] sm:$0xff] %v413_v34  ;;  %v414_v37 = vsel %vm286_vm2, %v222_v24, %v350_v31  ;;  %v415_v38 = vsel %vm287_vm3, %v223_v25, %v351_v32  ;;  %vm289_vm5 = vcmp.ge.f32.partialorder %v225_v27, 0.0  ;;  %v353_v39 = vmul.f32 0.1, %v225_v27 }
   0xc   :  { %478 = vst [vmem:[%s1154_s3 + $0x10] sm:$0xff] %v414_v37  ;;  %479 = vst [vmem:[%s1154_s3 + $0x18] sm:$0xff] %v415_v38  ;;  %v416_v40 = vsel %vm288_vm4, %v224_v26, %v352_v35  ;;  %v564_v43 = vunpack.c.l.bf16 %v677_v28  ;;  %v565_v45 = vunpack.c.h.bf16 %v677_v28  ;;  %v568_v46 = vunpack.c.l.bf16 %v678_v36  ;;  %v684_v37 = vld [vmem:[%s1151_s0 + $0x58] sm:$0xff]  }
   0xd   :  { %480 = vst [vmem:[%s1154_s3 + $0x20] sm:$0xff] %v416_v40  ;;  %v417_v44 = vsel %vm289_vm5, %v225_v27, %v353_v39  ;;  %v569_v47 = vunpack.c.h.bf16 %v678_v36  ;;  %vm290_vm6 = vcmp.ge.f32.partialorder %v226_v41, 0.0  ;;  %v354_v49 = vmul.f32 0.1, %v226_v41 }
   0xe   :  { %481 = vst [vmem:[%s1154_s3 + $0x28] sm:$0xff] %v417_v44  ;;  %vm291_vm7 = vcmp.ge.f32.partialorder %v227_v42, 0.0  ;;  %v355_v50 = vmul.f32 0.1, %v227_v42  ;;  %v157_v51 = vmul.f32 %v564_v43, %v731_v1  ;;  %v158_v52 = vmul.f32 %v565_v45, %v731_v1 }
   0xf   :  { %v159_v53 = vmul.f32 %v568_v46, %v731_v1  ;;  %v160_v54 = vmul.f32 %v569_v47, %v731_v1  ;;  %v418_v56 = vsel %vm290_vm6, %v226_v41, %v354_v49  ;;  %v572_v58 = vunpack.c.l.bf16 %v679_v48 }
  0x10   :  { %v419_v57 = vsel %vm291_vm7, %v227_v42, %v355_v50  ;;  %v573_v59 = vunpack.c.h.bf16 %v679_v48  ;;  %482 = vst [vmem:[%s1154_s3 + $0x30] sm:$0xff] %v418_v56  ;;  %v228_v60 = vadd.f32 %v745_v7, %v157_v51  ;;  %v229_v61 = vadd.f32 %v745_v7, %v158_v52 }
  0x11   :  { %483 = vst [vmem:[%s1154_s3 + $0x38] sm:$0xff] %v419_v57  ;;  %v230_v62 = vadd.f32 %v745_v7, %v159_v53  ;;  %v231_v63 = vadd.f32 %v745_v7, %v160_v54  ;;  %v161_v0 = vmul.f32 %v572_v58, %v731_v1  ;;  %v576_v3 = vunpack.c.l.bf16 %v680_v55  ;;  %v685_v58 = vld [vmem:[%s1151_s0 + $0x60] sm:$0xff]  }
  0x12   :  { %v162_v2 = vmul.f32 %v573_v59, %v731_v1  ;;  %v577_v4 = vunpack.c.h.bf16 %v680_v55  ;;  %vm292_vm8 = vcmp.ge.f32.partialorder %v228_v60, 0.0  ;;  %v356_v5 = vmul.f32 0.1, %v228_v60 }
  0x13   :  { %vm293_vm9 = vcmp.ge.f32.partialorder %v229_v61, 0.0  ;;  %v357_v6 = vmul.f32 0.1, %v229_v61  ;;  %vm294_vm10 = vcmp.ge.f32.partialorder %v230_v62, 0.0  ;;  %v358_v8 = vmul.f32 0.1, %v230_v62 }
  0x14   :  { %vm295_vm11 = vcmp.ge.f32.partialorder %v231_v63, 0.0  ;;  %v359_v9 = vmul.f32 0.1, %v231_v63  ;;  %v420_v10 = vsel %vm292_vm8, %v228_v60, %v356_v5  ;;  %v232_v12 = vadd.f32 %v745_v7, %v161_v0 }
  0x15   :  { %v421_v11 = vsel %vm293_vm9, %v229_v61, %v357_v6  ;;  %v233_v13 = vadd.f32 %v745_v7, %v162_v2  ;;  %484 = vst [vmem:[%s1154_s3 + $0x40] sm:$0xff] %v420_v10  ;;  %v422_v15 = vsel %vm294_vm10, %v230_v62, %v358_v8  ;;  %v163_v17 = vmul.f32 %v576_v3, %v731_v1 }
  0x16   :  { %485 = vst [vmem:[%s1154_s3 + $0x48] sm:$0xff] %v421_v11  ;;  %v423_v16 = vsel %vm295_vm11, %v231_v63, %v359_v9  ;;  %v164_v18 = vmul.f32 %v577_v4, %v731_v1  ;;  %486 = vst [vmem:[%s1154_s3 + $0x50] sm:$0xff] %v422_v15  ;;  %vm296_vm12 = vcmp.ge.f32.partialorder %v232_v12, 0.0  ;;  %v360_v20 = vmul.f32 0.1, %v232_v12  ;;  %v686_v63 = vld [vmem:[%s1151_s0 + $0x68] sm:$0xff]  }
  0x17   :  { %487 = vst [vmem:[%s1154_s3 + $0x58] sm:$0xff] %v423_v16  ;;  %vm297_vm13 = vcmp.ge.f32.partialorder %v233_v13, 0.0  ;;  %v361_v21 = vmul.f32 0.1, %v233_v13  ;;  %v234_v22 = vadd.f32 %v745_v7, %v163_v17  ;;  %v580_v24 = vunpack.c.l.bf16 %v681_v14 }
  0x18   :  { %v235_v23 = vadd.f32 %v745_v7, %v164_v18  ;;  %v581_v25 = vunpack.c.h.bf16 %v681_v14  ;;  %v424_v26 = vsel %vm296_vm12, %v232_v12, %v360_v20  ;;  %v584_v28 = vunpack.c.l.bf16 %v682_v19  ;;  %v687_v12 = vld [vmem:[%s1151_s0 + $0x70] sm:$0xff]  }
  0x19   :  { %v425_v27 = vsel %vm297_vm13, %v233_v13, %v361_v21  ;;  %v585_v29 = vunpack.c.h.bf16 %v682_v19  ;;  %488 = vst [vmem:[%s1154_s3 + $0x60] sm:$0xff] %v424_v26  ;;  %vm298_vm14 = vcmp.ge.f32.partialorder %v234_v22, 0.0  ;;  %v362_v31 = vmul.f32 0.1, %v234_v22  ;;  %v688_v19 = vld [vmem:[%s1151_s0 + $0x78] sm:$0xff]  }
  0x1a   :  { %489 = vst [vmem:[%s1154_s3 + $0x68] sm:$0xff] %v425_v27  ;;  %vm299_vm15 = vcmp.ge.f32.partialorder %v235_v23, 0.0  ;;  %v363_v32 = vmul.f32 0.1, %v235_v23  ;;  %v165_v33 = vmul.f32 %v580_v24, %v731_v1  ;;  %v166_v34 = vmul.f32 %v581_v25, %v731_v1 }
  0x1b   :  { %v167_v35 = vmul.f32 %v584_v28, %v731_v1  ;;  %v168_v36 = vmul.f32 %v585_v29, %v731_v1  ;;  %v426_v38 = vsel %vm298_vm14, %v234_v22, %v362_v31  ;;  %v588_v40 = vunpack.c.l.bf16 %v683_v30 }
  0x1c   :  { %v427_v39 = vsel %vm299_vm15, %v235_v23, %v363_v32  ;;  %v589_v41 = vunpack.c.h.bf16 %v683_v30  ;;  %490 = vst [vmem:[%s1154_s3 + $0x70] sm:$0xff] %v426_v38  ;;  %v236_v42 = vadd.f32 %v745_v7, %v165_v33  ;;  %v237_v43 = vadd.f32 %v745_v7, %v166_v34 }
  0x1d   :  { %491 = vst [vmem:[%s1154_s3 + $0x78] sm:$0xff] %v427_v39  ;;  %v238_v44 = vadd.f32 %v745_v7, %v167_v35  ;;  %v239_v45 = vadd.f32 %v745_v7, %v168_v36  ;;  %v169_v46 = vmul.f32 %v588_v40, %v731_v1  ;;  %v592_v48 = vunpack.c.l.bf16 %v684_v37  ;;  %v689_v40 = vld [vmem:[%s1151_s0 + $0x80] sm:$0xff]  }
  0x1e   :  { %v170_v47 = vmul.f32 %v589_v41, %v731_v1  ;;  %v593_v49 = vunpack.c.h.bf16 %v684_v37  ;;  %vm300_vm0 = vcmp.ge.f32.partialorder %v236_v42, 0.0  ;;  %v364_v50 = vmul.f32 0.1, %v236_v42 }
  0x1f   :  { %vm301_vm1 = vcmp.ge.f32.partialorder %v237_v43, 0.0  ;;  %v365_v51 = vmul.f32 0.1, %v237_v43  ;;  %vm302_vm2 = vcmp.ge.f32.partialorder %v238_v44, 0.0  ;;  %v366_v52 = vmul.f32 0.1, %v238_v44 }
  0x20   :  { %vm303_vm3 = vcmp.ge.f32.partialorder %v239_v45, 0.0  ;;  %v367_v53 = vmul.f32 0.1, %v239_v45  ;;  %v428_v54 = vsel %vm300_vm0, %v236_v42, %v364_v50  ;;  %v240_v56 = vadd.f32 %v745_v7, %v169_v46 }
  0x21   :  { %v429_v55 = vsel %vm301_vm1, %v237_v43, %v365_v51  ;;  %v241_v57 = vadd.f32 %v745_v7, %v170_v47  ;;  %492 = vst [vmem:[%s1154_s3 + $0x80] sm:$0xff] %v428_v54  ;;  %v430_v59 = vsel %vm302_vm2, %v238_v44, %v366_v52  ;;  %v171_v61 = vmul.f32 %v592_v48, %v731_v1 }
  0x22   :  { %493 = vst [vmem:[%s1154_s3 + $0x88] sm:$0xff] %v429_v55  ;;  %v431_v60 = vsel %vm303_vm3, %v239_v45, %v367_v53  ;;  %v172_v62 = vmul.f32 %v593_v49, %v731_v1  ;;  %494 = vst [vmem:[%s1154_s3 + $0x90] sm:$0xff] %v430_v59  ;;  %vm304_vm4 = vcmp.ge.f32.partialorder %v240_v56, 0.0  ;;  %v368_v0 = vmul.f32 0.1, %v240_v56  ;;  %v690_v45 = vld [vmem:[%s1151_s0 + $0x88] sm:$0xff]  }
  0x23   :  { %495 = vst [vmem:[%s1154_s3 + $0x98] sm:$0xff] %v431_v60  ;;  %vm305_vm5 = vcmp.ge.f32.partialorder %v241_v57, 0.0  ;;  %v369_v2 = vmul.f32 0.1, %v241_v57  ;;  %v242_v3 = vadd.f32 %v745_v7, %v171_v61  ;;  %v596_v5 = vunpack.c.l.bf16 %v685_v58 }
  0x24   :  { %v243_v4 = vadd.f32 %v745_v7, %v172_v62  ;;  %v597_v6 = vunpack.c.h.bf16 %v685_v58  ;;  %v432_v8 = vsel %vm304_vm4, %v240_v56, %v368_v0  ;;  %v600_v10 = vunpack.c.l.bf16 %v686_v63  ;;  %v691_v56 = vld [vmem:[%s1151_s0 + $0x90] sm:$0xff]  }
  0x25   :  { %v433_v9 = vsel %vm305_vm5, %v241_v57, %v369_v2  ;;  %v601_v11 = vunpack.c.h.bf16 %v686_v63  ;;  %496 = vst [vmem:[%s1154_s3 + $0xa0] sm:$0xff] %v432_v8  ;;  %vm306_vm6 = vcmp.ge.f32.partialorder %v242_v3, 0.0  ;;  %v370_v13 = vmul.f32 0.1, %v242_v3  ;;  %v692_v63 = vld [vmem:[%s1151_s0 + $0x98] sm:$0xff]  }
  0x26   :  { %497 = vst [vmem:[%s1154_s3 + $0xa8] sm:$0xff] %v433_v9  ;;  %vm307_vm7 = vcmp.ge.f32.partialorder %v243_v4, 0.0  ;;  %v371_v14 = vmul.f32 0.1, %v243_v4  ;;  %v173_v15 = vmul.f32 %v596_v5, %v731_v1  ;;  %v174_v16 = vmul.f32 %v597_v6, %v731_v1 }
  0x27   :  { %v175_v17 = vmul.f32 %v600_v10, %v731_v1  ;;  %v176_v18 = vmul.f32 %v601_v11, %v731_v1  ;;  %v434_v20 = vsel %vm306_vm6, %v242_v3, %v370_v13  ;;  %v604_v22 = vunpack.c.l.bf16 %v687_v12 }
  0x28   :  { %v435_v21 = vsel %vm307_vm7, %v243_v4, %v371_v14  ;;  %v605_v23 = vunpack.c.h.bf16 %v687_v12  ;;  %498 = vst [vmem:[%s1154_s3 + $0xb0] sm:$0xff] %v434_v20  ;;  %v244_v24 = vadd.f32 %v745_v7, %v173_v15  ;;  %v245_v25 = vadd.f32 %v745_v7, %v174_v16 }
  0x29   :  { %499 = vst [vmem:[%s1154_s3 + $0xb8] sm:$0xff] %v435_v21  ;;  %v246_v26 = vadd.f32 %v745_v7, %v175_v17  ;;  %v247_v27 = vadd.f32 %v745_v7, %v176_v18  ;;  %v177_v28 = vmul.f32 %v604_v22, %v731_v1  ;;  %v608_v30 = vunpack.c.l.bf16 %v688_v19  ;;  %v693_v22 = vld [vmem:[%s1151_s0 + $0xa0] sm:$0xff]  }
  0x2a   :  { %v178_v29 = vmul.f32 %v605_v23, %v731_v1  ;;  %v609_v31 = vunpack.c.h.bf16 %v688_v19  ;;  %vm308_vm8 = vcmp.ge.f32.partialorder %v244_v24, 0.0  ;;  %v372_v32 = vmul.f32 0.1, %v244_v24 }
  0x2b   :  { %vm309_vm9 = vcmp.ge.f32.partialorder %v245_v25, 0.0  ;;  %v373_v33 = vmul.f32 0.1, %v245_v25  ;;  %vm310_vm10 = vcmp.ge.f32.partialorder %v246_v26, 0.0  ;;  %v374_v34 = vmul.f32 0.1, %v246_v26 }
  0x2c   :  { %vm311_vm11 = vcmp.ge.f32.partialorder %v247_v27, 0.0  ;;  %v375_v35 = vmul.f32 0.1, %v247_v27  ;;  %v436_v36 = vsel %vm308_vm8, %v244_v24, %v372_v32  ;;  %v248_v38 = vadd.f32 %v745_v7, %v177_v28 }
  0x2d   :  { %v437_v37 = vsel %vm309_vm9, %v245_v25, %v373_v33  ;;  %v249_v39 = vadd.f32 %v745_v7, %v178_v29  ;;  %500 = vst [vmem:[%s1154_s3 + $0xc0] sm:$0xff] %v436_v36  ;;  %v438_v41 = vsel %vm310_vm10, %v246_v26, %v374_v34  ;;  %v179_v43 = vmul.f32 %v608_v30, %v731_v1 }
  0x2e   :  { %501 = vst [vmem:[%s1154_s3 + $0xc8] sm:$0xff] %v437_v37  ;;  %v439_v42 = vsel %vm311_vm11, %v247_v27, %v375_v35  ;;  %v180_v44 = vmul.f32 %v609_v31, %v731_v1  ;;  %502 = vst [vmem:[%s1154_s3 + $0xd0] sm:$0xff] %v438_v41  ;;  %vm312_vm12 = vcmp.ge.f32.partialorder %v248_v38, 0.0  ;;  %v376_v46 = vmul.f32 0.1, %v248_v38  ;;  %v694_v27 = vld [vmem:[%s1151_s0 + $0xa8] sm:$0xff]  }
  0x2f   :  { %503 = vst [vmem:[%s1154_s3 + $0xd8] sm:$0xff] %v439_v42  ;;  %vm313_vm13 = vcmp.ge.f32.partialorder %v249_v39, 0.0  ;;  %v377_v47 = vmul.f32 0.1, %v249_v39  ;;  %v250_v48 = vadd.f32 %v745_v7, %v179_v43  ;;  %v612_v50 = vunpack.c.l.bf16 %v689_v40 }
  0x30   :  { %v251_v49 = vadd.f32 %v745_v7, %v180_v44  ;;  %v613_v51 = vunpack.c.h.bf16 %v689_v40  ;;  %v440_v52 = vsel %vm312_vm12, %v248_v38, %v376_v46  ;;  %v616_v54 = vunpack.c.l.bf16 %v690_v45  ;;  %v695_v38 = vld [vmem:[%s1151_s0 + $0xb0] sm:$0xff]  }
  0x31   :  { %v441_v53 = vsel %vm313_vm13, %v249_v39, %v377_v47  ;;  %v617_v55 = vunpack.c.h.bf16 %v690_v45  ;;  %504 = vst [vmem:[%s1154_s3 + $0xe0] sm:$0xff] %v440_v52  ;;  %vm314_vm14 = vcmp.ge.f32.partialorder %v250_v48, 0.0  ;;  %v378_v57 = vmul.f32 0.1, %v250_v48  ;;  %v696_v45 = vld [vmem:[%s1151_s0 + $0xb8] sm:$0xff]  }
  0x32   :  { %505 = vst [vmem:[%s1154_s3 + $0xe8] sm:$0xff] %v441_v53  ;;  %vm315_vm15 = vcmp.ge.f32.partialorder %v251_v49, 0.0  ;;  %v379_v58 = vmul.f32 0.1, %v251_v49  ;;  %v181_v59 = vmul.f32 %v612_v50, %v731_v1  ;;  %v182_v60 = vmul.f32 %v613_v51, %v731_v1 }
  0x33   :  { %v183_v61 = vmul.f32 %v616_v54, %v731_v1  ;;  %v184_v62 = vmul.f32 %v617_v55, %v731_v1  ;;  %v442_v0 = vsel %vm314_vm14, %v250_v48, %v378_v57  ;;  %v620_v3 = vunpack.c.l.bf16 %v691_v56 }
  0x34   :  { %v443_v2 = vsel %vm315_vm15, %v251_v49, %v379_v58  ;;  %v621_v4 = vunpack.c.h.bf16 %v691_v56  ;;  %506 = vst [vmem:[%s1154_s3 + $0xf0] sm:$0xff] %v442_v0  ;;  %v252_v5 = vadd.f32 %v745_v7, %v181_v59  ;;  %v253_v6 = vadd.f32 %v745_v7, %v182_v60 }
  0x35   :  { %507 = vst [vmem:[%s1154_s3 + $0xf8] sm:$0xff] %v443_v2  ;;  %v254_v8 = vadd.f32 %v745_v7, %v183_v61  ;;  %v255_v9 = vadd.f32 %v745_v7, %v184_v62  ;;  %v185_v10 = vmul.f32 %v620_v3, %v731_v1  ;;  %v624_v12 = vunpack.c.l.bf16 %v692_v63  ;;  %v697_v3 = vld [vmem:[%s1151_s0 + $0xc0] sm:$0xff]  }
  0x36   :  { %v186_v11 = vmul.f32 %v621_v4, %v731_v1  ;;  %v625_v13 = vunpack.c.h.bf16 %v692_v63  ;;  %vm316_vm0 = vcmp.ge.f32.partialorder %v252_v5, 0.0  ;;  %v380_v14 = vmul.f32 0.1, %v252_v5 }
  0x37   :  { %vm317_vm1 = vcmp.ge.f32.partialorder %v253_v6, 0.0  ;;  %v381_v15 = vmul.f32 0.1, %v253_v6  ;;  %vm318_vm2 = vcmp.ge.f32.partialorder %v254_v8, 0.0  ;;  %v382_v16 = vmul.f32 0.1, %v254_v8 }
  0x38   :  { %vm319_vm3 = vcmp.ge.f32.partialorder %v255_v9, 0.0  ;;  %v383_v17 = vmul.f32 0.1, %v255_v9  ;;  %v444_v18 = vsel %vm316_vm0, %v252_v5, %v380_v14  ;;  %v256_v20 = vadd.f32 %v745_v7, %v185_v10 }
  0x39   :  { %v445_v19 = vsel %vm317_vm1, %v253_v6, %v381_v15  ;;  %v257_v21 = vadd.f32 %v745_v7, %v186_v11  ;;  %508 = vst [vmem:[%s1154_s3 + $0x100] sm:$0xff] %v444_v18  ;;  %v446_v23 = vsel %vm318_vm2, %v254_v8, %v382_v16  ;;  %v187_v25 = vmul.f32 %v624_v12, %v731_v1 }
  0x3a   :  { %509 = vst [vmem:[%s1154_s3 + $0x108] sm:$0xff] %v445_v19  ;;  %v447_v24 = vsel %vm319_vm3, %v255_v9, %v383_v17  ;;  %v188_v26 = vmul.f32 %v625_v13, %v731_v1  ;;  %510 = vst [vmem:[%s1154_s3 + $0x110] sm:$0xff] %v446_v23  ;;  %vm320_vm4 = vcmp.ge.f32.partialorder %v256_v20, 0.0  ;;  %v384_v28 = vmul.f32 0.1, %v256_v20  ;;  %v698_v9 = vld [vmem:[%s1151_s0 + $0xc8] sm:$0xff]  }
  0x3b   :  { %511 = vst [vmem:[%s1154_s3 + $0x118] sm:$0xff] %v447_v24  ;;  %vm321_vm5 = vcmp.ge.f32.partialorder %v257_v21, 0.0  ;;  %v385_v29 = vmul.f32 0.1, %v257_v21  ;;  %v258_v30 = vadd.f32 %v745_v7, %v187_v25  ;;  %v628_v32 = vunpack.c.l.bf16 %v693_v22 }
  0x3c   :  { %v259_v31 = vadd.f32 %v745_v7, %v188_v26  ;;  %v629_v33 = vunpack.c.h.bf16 %v693_v22  ;;  %v448_v34 = vsel %vm320_vm4, %v256_v20, %v384_v28  ;;  %v632_v36 = vunpack.c.l.bf16 %v694_v27  ;;  %v699_v20 = vld [vmem:[%s1151_s0 + $0xd0] sm:$0xff]  }
  0x3d   :  { %v449_v35 = vsel %vm321_vm5, %v257_v21, %v385_v29  ;;  %v633_v37 = vunpack.c.h.bf16 %v694_v27  ;;  %512 = vst [vmem:[%s1154_s3 + $0x120] sm:$0xff] %v448_v34  ;;  %vm322_vm6 = vcmp.ge.f32.partialorder %v258_v30, 0.0  ;;  %v386_v39 = vmul.f32 0.1, %v258_v30  ;;  %v700_v27 = vld [vmem:[%s1151_s0 + $0xd8] sm:$0xff]  }
  0x3e   :  { %513 = vst [vmem:[%s1154_s3 + $0x128] sm:$0xff] %v449_v35  ;;  %vm323_vm7 = vcmp.ge.f32.partialorder %v259_v31, 0.0  ;;  %v387_v40 = vmul.f32 0.1, %v259_v31  ;;  %v189_v41 = vmul.f32 %v628_v32, %v731_v1  ;;  %v190_v42 = vmul.f32 %v629_v33, %v731_v1 }
  0x3f   :  { %v191_v43 = vmul.f32 %v632_v36, %v731_v1  ;;  %v192_v44 = vmul.f32 %v633_v37, %v731_v1  ;;  %v450_v46 = vsel %vm322_vm6, %v258_v30, %v386_v39  ;;  %v636_v48 = vunpack.c.l.bf16 %v695_v38 }
  0x40   :  { %v451_v47 = vsel %vm323_vm7, %v259_v31, %v387_v40  ;;  %v637_v49 = vunpack.c.h.bf16 %v695_v38  ;;  %514 = vst [vmem:[%s1154_s3 + $0x130] sm:$0xff] %v450_v46  ;;  %v260_v50 = vadd.f32 %v745_v7, %v189_v41  ;;  %v261_v51 = vadd.f32 %v745_v7, %v190_v42 }
  0x41   :  { %515 = vst [vmem:[%s1154_s3 + $0x138] sm:$0xff] %v451_v47  ;;  %v262_v52 = vadd.f32 %v745_v7, %v191_v43  ;;  %v263_v53 = vadd.f32 %v745_v7, %v192_v44  ;;  %v193_v54 = vmul.f32 %v636_v48, %v731_v1  ;;  %v640_v56 = vunpack.c.l.bf16 %v696_v45  ;;  %v701_v48 = vld [vmem:[%s1151_s0 + $0xe0] sm:$0xff]  }
  0x42   :  { %v194_v55 = vmul.f32 %v637_v49, %v731_v1  ;;  %v641_v57 = vunpack.c.h.bf16 %v696_v45  ;;  %vm324_vm8 = vcmp.ge.f32.partialorder %v260_v50, 0.0  ;;  %v388_v58 = vmul.f32 0.1, %v260_v50 }
  0x43   :  { %vm325_vm9 = vcmp.ge.f32.partialorder %v261_v51, 0.0  ;;  %v389_v59 = vmul.f32 0.1, %v261_v51  ;;  %vm326_vm10 = vcmp.ge.f32.partialorder %v262_v52, 0.0  ;;  %v390_v60 = vmul.f32 0.1, %v262_v52 }
  0x44   :  { %vm327_vm11 = vcmp.ge.f32.partialorder %v263_v53, 0.0  ;;  %v391_v61 = vmul.f32 0.1, %v263_v53  ;;  %v452_v62 = vsel %vm324_vm8, %v260_v50, %v388_v58  ;;  %v264_v0 = vadd.f32 %v745_v7, %v193_v54 }
  0x45   :  { %v453_v63 = vsel %vm325_vm9, %v261_v51, %v389_v59  ;;  %v265_v2 = vadd.f32 %v745_v7, %v194_v55  ;;  %516 = vst [vmem:[%s1154_s3 + $0x140] sm:$0xff] %v452_v62  ;;  %v454_v4 = vsel %vm326_vm10, %v262_v52, %v390_v60  ;;  %v195_v6 = vmul.f32 %v640_v56, %v731_v1 }
  0x46   :  { %517 = vst [vmem:[%s1154_s3 + $0x148] sm:$0xff] %v453_v63  ;;  %v455_v5 = vsel %vm327_vm11, %v263_v53, %v391_v61  ;;  %v196_v8 = vmul.f32 %v641_v57, %v731_v1  ;;  %518 = vst [vmem:[%s1154_s3 + $0x150] sm:$0xff] %v454_v4  ;;  %vm328_vm12 = vcmp.ge.f32.partialorder %v264_v0, 0.0  ;;  %v392_v10 = vmul.f32 0.1, %v264_v0  ;;  %v702_v53 = vld [vmem:[%s1151_s0 + $0xe8] sm:$0xff]  }
  0x47   :  { %519 = vst [vmem:[%s1154_s3 + $0x158] sm:$0xff] %v455_v5  ;;  %vm329_vm13 = vcmp.ge.f32.partialorder %v265_v2, 0.0  ;;  %v393_v11 = vmul.f32 0.1, %v265_v2  ;;  %v266_v12 = vadd.f32 %v745_v7, %v195_v6  ;;  %v644_v14 = vunpack.c.l.bf16 %v697_v3 }
  0x48   :  { %v267_v13 = vadd.f32 %v745_v7, %v196_v8  ;;  %v645_v15 = vunpack.c.h.bf16 %v697_v3  ;;  %v456_v16 = vsel %vm328_vm12, %v264_v0, %v392_v10  ;;  %v648_v18 = vunpack.c.l.bf16 %v698_v9  ;;  %v703_v0 = vld [vmem:[%s1151_s0 + $0xf0] sm:$0xff]  }
  0x49   :  { %v457_v17 = vsel %vm329_vm13, %v265_v2, %v393_v11  ;;  %v649_v19 = vunpack.c.h.bf16 %v698_v9  ;;  %520 = vst [vmem:[%s1154_s3 + $0x160] sm:$0xff] %v456_v16  ;;  %vm330_vm14 = vcmp.ge.f32.partialorder %v266_v12, 0.0  ;;  %v394_v21 = vmul.f32 0.1, %v266_v12  ;;  %v704_v9 = vld [vmem:[%s1151_s0 + $0xf8] sm:$0xff]  }
  0x4a   :  { %521 = vst [vmem:[%s1154_s3 + $0x168] sm:$0xff] %v457_v17  ;;  %vm331_vm15 = vcmp.ge.f32.partialorder %v267_v13, 0.0  ;;  %v395_v22 = vmul.f32 0.1, %v267_v13  ;;  %v197_v23 = vmul.f32 %v644_v14, %v731_v1  ;;  %v198_v24 = vmul.f32 %v645_v15, %v731_v1 }
  0x4b   :  { %v199_v25 = vmul.f32 %v648_v18, %v731_v1  ;;  %v200_v26 = vmul.f32 %v649_v19, %v731_v1  ;;  %v458_v28 = vsel %vm330_vm14, %v266_v12, %v394_v21  ;;  %v652_v30 = vunpack.c.l.bf16 %v699_v20 }
  0x4c   :  { %v459_v29 = vsel %vm331_vm15, %v267_v13, %v395_v22  ;;  %v653_v31 = vunpack.c.h.bf16 %v699_v20  ;;  %522 = vst [vmem:[%s1154_s3 + $0x170] sm:$0xff] %v458_v28  ;;  %v268_v32 = vadd.f32 %v745_v7, %v197_v23  ;;  %v269_v33 = vadd.f32 %v745_v7, %v198_v24 }
  0x4d   :  { %523 = vst [vmem:[%s1154_s3 + $0x178] sm:$0xff] %v459_v29  ;;  %v270_v34 = vadd.f32 %v745_v7, %v199_v25  ;;  %v271_v35 = vadd.f32 %v745_v7, %v200_v26  ;;  %v201_v36 = vmul.f32 %v652_v30, %v731_v1  ;;  %v656_v38 = vunpack.c.l.bf16 %v700_v27 }
  0x4e   :  { %v202_v37 = vmul.f32 %v653_v31, %v731_v1  ;;  %v657_v39 = vunpack.c.h.bf16 %v700_v27  ;;  %vm332_vm0 = vcmp.ge.f32.partialorder %v268_v32, 0.0  ;;  %v396_v40 = vmul.f32 0.1, %v268_v32 }
  0x4f   :  { %vm333_vm1 = vcmp.ge.f32.partialorder %v269_v33, 0.0  ;;  %v397_v41 = vmul.f32 0.1, %v269_v33  ;;  %vm334_vm2 = vcmp.ge.f32.partialorder %v270_v34, 0.0  ;;  %v398_v42 = vmul.f32 0.1, %v270_v34 }
  0x50   :  { %vm335_vm3 = vcmp.ge.f32.partialorder %v271_v35, 0.0  ;;  %v399_v43 = vmul.f32 0.1, %v271_v35  ;;  %v460_v44 = vsel %vm332_vm0, %v268_v32, %v396_v40  ;;  %v272_v46 = vadd.f32 %v745_v7, %v201_v36 }
  0x51   :  { %v461_v45 = vsel %vm333_vm1, %v269_v33, %v397_v41  ;;  %v273_v47 = vadd.f32 %v745_v7, %v202_v37  ;;  %524 = vst [vmem:[%s1154_s3 + $0x180] sm:$0xff] %v460_v44  ;;  %v462_v49 = vsel %vm334_vm2, %v270_v34, %v398_v42  ;;  %v203_v51 = vmul.f32 %v656_v38, %v731_v1 }
  0x52   :  { %525 = vst [vmem:[%s1154_s3 + $0x188] sm:$0xff] %v461_v45  ;;  %v463_v50 = vsel %vm335_vm3, %v271_v35, %v399_v43  ;;  %v204_v52 = vmul.f32 %v657_v39, %v731_v1  ;;  %526 = vst [vmem:[%s1154_s3 + $0x190] sm:$0xff] %v462_v49  ;;  %vm336_vm4 = vcmp.ge.f32.partialorder %v272_v46, 0.0  ;;  %v400_v54 = vmul.f32 0.1, %v272_v46 }
  0x53   :  { %527 = vst [vmem:[%s1154_s3 + $0x198] sm:$0xff] %v463_v50  ;;  %vm337_vm5 = vcmp.ge.f32.partialorder %v273_v47, 0.0  ;;  %v401_v55 = vmul.f32 0.1, %v273_v47  ;;  %v274_v56 = vadd.f32 %v745_v7, %v203_v51  ;;  %v660_v58 = vunpack.c.l.bf16 %v701_v48 }
  0x54   :  { %v275_v57 = vadd.f32 %v745_v7, %v204_v52  ;;  %v661_v59 = vunpack.c.h.bf16 %v701_v48  ;;  %v464_v60 = vsel %vm336_vm4, %v272_v46, %v400_v54  ;;  %v664_v62 = vunpack.c.l.bf16 %v702_v53 }
  0x55   :  { %v465_v61 = vsel %vm337_vm5, %v273_v47, %v401_v55  ;;  %v665_v63 = vunpack.c.h.bf16 %v702_v53  ;;  %528 = vst [vmem:[%s1154_s3 + $0x1a0] sm:$0xff] %v464_v60  ;;  %vm338_vm6 = vcmp.ge.f32.partialorder %v274_v56, 0.0  ;;  %v402_v2 = vmul.f32 0.1, %v274_v56 }
  0x56   :  { %529 = vst [vmem:[%s1154_s3 + $0x1a8] sm:$0xff] %v465_v61  ;;  %vm339_vm7 = vcmp.ge.f32.partialorder %v275_v57, 0.0  ;;  %v403_v3 = vmul.f32 0.1, %v275_v57  ;;  %v205_v4 = vmul.f32 %v660_v58, %v731_v1  ;;  %v206_v5 = vmul.f32 %v661_v59, %v731_v1 }
  0x57   :  { %v207_v6 = vmul.f32 %v664_v62, %v731_v1  ;;  %v208_v8 = vmul.f32 %v665_v63, %v731_v1  ;;  %v466_v10 = vsel %vm338_vm6, %v274_v56, %v402_v2  ;;  %v668_v12 = vunpack.c.l.bf16 %v703_v0 }
  0x58   :  { %v467_v11 = vsel %vm339_vm7, %v275_v57, %v403_v3  ;;  %v669_v13 = vunpack.c.h.bf16 %v703_v0  ;;  %530 = vst [vmem:[%s1154_s3 + $0x1b0] sm:$0xff] %v466_v10  ;;  %v276_v14 = vadd.f32 %v745_v7, %v205_v4  ;;  %v277_v15 = vadd.f32 %v745_v7, %v206_v5 }
  0x59   :  { %531 = vst [vmem:[%s1154_s3 + $0x1b8] sm:$0xff] %v467_v11  ;;  %v278_v16 = vadd.f32 %v745_v7, %v207_v6  ;;  %v279_v17 = vadd.f32 %v745_v7, %v208_v8  ;;  %v209_v18 = vmul.f32 %v668_v12, %v731_v1  ;;  %v672_v20 = vunpack.c.l.bf16 %v704_v9 }
  0x5a   :  { %v210_v19 = vmul.f32 %v669_v13, %v731_v1  ;;  %v673_v21 = vunpack.c.h.bf16 %v704_v9  ;;  %vm340_vm8 = vcmp.ge.f32.partialorder %v276_v14, 0.0  ;;  %v404_v22 = vmul.f32 0.1, %v276_v14 }
  0x5b   :  { %vm341_vm9 = vcmp.ge.f32.partialorder %v277_v15, 0.0  ;;  %v405_v23 = vmul.f32 0.1, %v277_v15  ;;  %vm342_vm10 = vcmp.ge.f32.partialorder %v278_v16, 0.0  ;;  %v406_v24 = vmul.f32 0.1, %v278_v16 }
  0x5c   :  { %vm343_vm11 = vcmp.ge.f32.partialorder %v279_v17, 0.0  ;;  %v407_v25 = vmul.f32 0.1, %v279_v17  ;;  %v468_v26 = vsel %vm340_vm8, %v276_v14, %v404_v22  ;;  %v280_v28 = vadd.f32 %v745_v7, %v209_v18 }
  0x5d   :  { %v469_v27 = vsel %vm341_vm9, %v277_v15, %v405_v23  ;;  %v281_v29 = vadd.f32 %v745_v7, %v210_v19  ;;  %532 = vst [vmem:[%s1154_s3 + $0x1c0] sm:$0xff] %v468_v26  ;;  %v470_v30 = vsel %vm342_vm10, %v278_v16, %v406_v24  ;;  %v211_v32 = vmul.f32 %v672_v20, %v731_v1 }
  0x5e   :  { %533 = vst [vmem:[%s1154_s3 + $0x1c8] sm:$0xff] %v469_v27  ;;  %v471_v31 = vsel %vm343_vm11, %v279_v17, %v407_v25  ;;  %v212_v33 = vmul.f32 %v673_v21, %v731_v1  ;;  %534 = vst [vmem:[%s1154_s3 + $0x1d0] sm:$0xff] %v470_v30  ;;  %vm344_vm12 = vcmp.ge.f32.partialorder %v280_v28, 0.0  ;;  %v408_v34 = vmul.f32 0.1, %v280_v28 }
  0x5f   :  { %535 = vst [vmem:[%s1154_s3 + $0x1d8] sm:$0xff] %v471_v31  ;;  %vm345_vm13 = vcmp.ge.f32.partialorder %v281_v29, 0.0  ;;  %v409_v35 = vmul.f32 0.1, %v281_v29  ;;  %v282_v36 = vadd.f32 %v745_v7, %v211_v32 }
  0x60   :  { %v283_v37 = vadd.f32 %v745_v7, %v212_v33  ;;  %v472_v38 = vsel %vm344_vm12, %v280_v28, %v408_v34 }
  0x61   :  { %v473_v39 = vsel %vm345_vm13, %v281_v29, %v409_v35  ;;  %536 = vst [vmem:[%s1154_s3 + $0x1e0] sm:$0xff] %v472_v38  ;;  %vm346_vm14 = vcmp.ge.f32.partialorder %v282_v36, 0.0  ;;  %v410_v1 = vmul.f32 0.1, %v282_v36 }
  0x62   :  { %537 = vst [vmem:[%s1154_s3 + $0x1e8] sm:$0xff] %v473_v39  ;;  %vm347_vm15 = vcmp.ge.f32.partialorder %v283_v37, 0.0  ;;  %v411_v40 = vmul.f32 0.1, %v283_v37 }
  0x63   :  { %v474_v41 = vsel %vm346_vm14, %v282_v36, %v410_v1 }
  0x64   :  { %v475_v42 = vsel %vm347_vm15, %v283_v37, %v411_v40  ;;  %538 = vst [vmem:[%s1154_s3 + $0x1f0] sm:$0xff] %v474_v41 }
  0x65   :  { %539 = vst [vmem:[%s1154_s3 + $0x1f8] sm:$0xff] %v475_v42 }

</bundles_post_ra>
